<compile_context>
chip_gen: v6e
topology: v6e:2x2x1
jax: 0.10.0
libtpu: 0.0.40
codegen_flags: <defaults>
</compile_context>

<pallas_src>
import jax
import jax.numpy as jnp
from jax import lax
from jax.experimental import pallas as pl
from jax.experimental.pallas import tpu as pltpu

# ---- model hyper-parameters (small synthetic config consistent with __init__) ----
B = 8                    # batch
INPUT_DIM = 32           # input_dim
N_CAT = 4                # n_cat_features (categorical tail of x)
HIDDEN_DIMS = (64, 32)   # hidden_dims
EMBED_DIM = 16           # embed_dim
CODEBOOK_SIZE = 64       # codebook_size
N_LAYERS = 3             # n_layers
COMMIT_W = 0.25          # commitment_weight
EPS = 1e-12

OUT_W = 128              # lane-dense packed output width (one unmasked store)

# ------------------------- parameter-slab layout (static) -------------------------
def _make_layout(shapes, row_align):
    layout, r = {}, 0
    for name, (nr, nc) in shapes:
        layout[name] = (r, nr, nc)
        r += -(-nr // row_align) * row_align
    return layout, r


def _f32_shapes():
    s = [
        ("ew0", (INPUT_DIM, HIDDEN_DIMS[0])),
        ("eb0", (1, HIDDEN_DIMS[0])),
        ("ew1", (HIDDEN_DIMS[0], HIDDEN_DIMS[1])),
        ("eb1", (1, HIDDEN_DIMS[1])),
        ("ew2", (HIDDEN_DIMS[1], EMBED_DIM)),
        ("eb2", (1, EMBED_DIM)),
        ("db0", (1, HIDDEN_DIMS[1])),
        ("db1", (1, HIDDEN_DIMS[0])),
        ("db2", (1, INPUT_DIM)),
    ]
    for l in range(N_LAYERS):
        s.append((f"e2_{l}", (1, CODEBOOK_SIZE)))            # ||e_k||^2 row
        s.append((f"cbt_{l}", (EMBED_DIM, CODEBOOK_SIZE)))   # codebook^T (D, K)
        s.append((f"cb_{l}", (CODEBOOK_SIZE, EMBED_DIM)))    # codebook (K, D)
    return tuple(s)


_F32_SHAPES = _f32_shapes()
_F32_ALIGN = 8
_F32_WIDTH = CODEBOOK_SIZE
_F32_LAYOUT, _F32_ROWS = _make_layout(_F32_SHAPES, _F32_ALIGN)

_BF16_SHAPES = (
    ("dw0", (EMBED_DIM, HIDDEN_DIMS[1])),
    ("dw1", (HIDDEN_DIMS[1], HIDDEN_DIMS[0])),
    ("dw2", (HIDDEN_DIMS[0], INPUT_DIM)),
)
_BF16_ALIGN = 16          # bf16 native sublane tile is 16 rows
_BF16_WIDTH = HIDDEN_DIMS[0]
_BF16_LAYOUT, _BF16_ROWS = _make_layout(_BF16_SHAPES, _BF16_ALIGN)


def _pack_slab(named_arrays, shapes, total_rows, row_align, width, dtype):
    """Host-side: pack 2-D params row-wise into one (total_rows, width) slab."""
    blocks = []
    for name, (nr, nc) in shapes:
        a = named_arrays[name]
        assert a.shape == (nr, nc), (name, a.shape, (nr, nc))
        pad_r = -(-nr // row_align) * row_align - nr
        blocks.append(jnp.pad(a.astype(dtype), ((0, pad_r), (0, width - nc))))
    slab = jnp.concatenate(blocks, axis=0)
    assert slab.shape == (total_rows, width)
    return slab


# --------------------------------- kernel helpers ----------------------------------
def _silu_exact(x):
    # Encoder path: exact divide (feeds the argmin / sem_ids path).
    return x * (1.0 / (1.0 + jnp.exp(-x)))


def _silu_approx(x):
    # Decoder path: approximate reciprocal -> EUP slot, off the VPU critical path.
    return x * pl.reciprocal(1.0 + jnp.exp(-x), approx=True)


def _l2norm(x):
    # Decoder path only: rsqrt on the EUP.  max(ss, eps^2) == (max(norm, eps))^2.
    ss = jnp.sum(x * x, axis=-1, keepdims=True)
    return x * lax.rsqrt(jnp.maximum(ss, EPS * EPS))


# ------------------------------------ kernel ---------------------------------------
def rqvae_kernel(inv_t_ref, x_ref, gumbel_ref, fp_ref, dwp_ref, out_ref):
    def fview(name):                                   # static view into f32 slab
        r, nr, nc = _F32_LAYOUT[name]
        return fp_ref[r:r + nr, 0:nc]

    def dview(name):                                   # static view into bf16 slab
        r, nr, nc = _BF16_LAYOUT[name]
        return dwp_ref[r:r + nr, 0:nc]

    x = x_ref[...]                                     # (B, INPUT_DIM) f32
    inv_t = inv_t_ref[0]                               # runtime scalar 1/gumbel_t

    # ---------------- encoder MLP (Linear + SiLU, normalize=False), f32 -----------
    h = _silu_exact(jnp.dot(x, fview("ew0"),
                            preferred_element_type=jnp.float32) + fview("eb0"))
    h = _silu_exact(jnp.dot(h, fview("ew1"),
                            preferred_element_type=jnp.float32) + fview("eb1"))
    res = jnp.dot(h, fview("ew2"),
                  preferred_element_type=jnp.float32) + fview("eb2")        # (B, D)

    # ---------------- residual quantization (Gumbel-softmax forward mode) ---------
    rq_loss = jnp.zeros((B, 1), jnp.float32)
    emb_sum = jnp.zeros((B, EMBED_DIM), jnp.float32)
    iota_k = lax.broadcasted_iota(jnp.int32, (B, CODEBOOK_SIZE), 1)   # hoisted
    norm_cols, id_cols = [], []
    for l in range(N_LAYERS):
        cbt = fview(f"cbt_{l}")                         # (D, K) pre-transposed
        cb = fview(f"cb_{l}")                           # (K, D)
        e2 = fview(f"e2_{l}")                           # (1, K) precomputed ||e||^2
        g = gumbel_ref[l]                               # (B, K)

        # ||res - e||^2 up to a row-constant (||res||^2 dropped; cancels in the
        # argmin and in the row softmax after max-subtraction).
        xe = jnp.dot(res, cbt, preferred_element_type=jnp.float32)   # (B, K)
        dist = e2 - 2.0 * xe                                          # (B, K)

        # hard semantic ids = argmin of distance (first index on ties)
        min_d = jnp.min(dist, axis=1, keepdims=True)
        ids = jnp.min(jnp.where(dist <= min_d, iota_k, CODEBOOK_SIZE),
                      axis=1, keepdims=True)                           # (B, 1) int32
        id_cols.append(ids)

        # gumbel-softmax weights (stable softmax; multiply by 1/t, exact divide
        # for the normalization so the residual matches the f32 reference)
        logits = (g - dist) * inv_t
        logits = logits - jnp.max(logits, axis=1, keepdims=True)
        w = jnp.exp(logits)
        w = w / jnp.sum(w, axis=1, keepdims=True)
        emb = jnp.dot(w, cb, preferred_element_type=jnp.float32)       # (B, D)

        # vq loss: ||sg(x)-e||^2 + commitment * ||x-sg(e)||^2 (same value fwd)
        diff2 = jnp.sum((emb - res) ** 2, axis=1, keepdims=True)
        rq_loss = rq_loss + (1.0 + COMMIT_W) * diff2

        norm_cols.append(jnp.sqrt(jnp.sum(emb * emb, axis=1, keepdims=True)))
        emb_sum = emb_sum + emb
        res = res - emb

    # ---------------- decoder MLP on embs.sum(axis=-1) (normalize=True) -----------
    # bf16 operands on the MXU (weights pre-cast host-side), f32 accumulation.
    h = _silu_approx(jnp.dot(emb_sum.astype(jnp.bfloat16), dview("dw0"),
                             preferred_element_type=jnp.float32) + fview("db0"))
    h = _silu_approx(jnp.dot(h.astype(jnp.bfloat16), dview("dw1"),
                             preferred_element_type=jnp.float32) + fview("db1"))
    x_hat = jnp.dot(h.astype(jnp.bfloat16), dview("dw2"),
                    preferred_element_type=jnp.float32) + fview("db2")
    x_hat = _l2norm(x_hat)                              # decoder L2Norm layer

    # cat([l2norm(x_hat[..., :-n_cat]), x_hat[..., -n_cat:]])
    dense_hat = _l2norm(x_hat[:, :INPUT_DIM - N_CAT])
    cat_logits = x_hat[:, INPUT_DIM - N_CAT:]

    # ---------------- categorical reconstruction loss -----------------------------
    x_dense = x[:, :INPUT_DIM - N_CAT]
    x_cat = x[:, INPUT_DIM - N_CAT:]
    mse = jnp.sum((dense_hat - x_dense) ** 2, axis=1, keepdims=True)
    z = cat_logits
    bce = jnp.maximum(z, 0.0) - z * x_cat + jnp.log(1.0 + jnp.exp(-jnp.abs(z)))
    recon = mse + jnp.sum(bce, axis=1, keepdims=True)                 # (B, 1)

    inv_b = 1.0 / B
    loss_m = jnp.sum(recon + rq_loss, axis=0, keepdims=True) * inv_b  # (1, 1)
    recon_m = jnp.sum(recon, axis=0, keepdims=True) * inv_b
    rq_m = jnp.sum(rq_loss, axis=0, keepdims=True) * inv_b

    # ---------------- single lane-dense packed output -----------------------------
    # cols 0..2: embs_norm, cols 3..5: sem_ids (exact small ints as f32),
    # cols 6..8: [loss, recon, rq] (broadcast to every row; wrapper reads row 0).
    idf_cols = [c.astype(jnp.float32) for c in id_cols]
    stat_cols = [jnp.broadcast_to(loss_m, (B, 1)),
                 jnp.broadcast_to(recon_m, (B, 1)),
                 jnp.broadcast_to(rq_m, (B, 1))]
    pad = jnp.zeros((B, OUT_W - (2 * N_LAYERS + 3)), jnp.float32)
    out_ref[...] = jnp.concatenate(norm_cols + idf_cols + stat_cols + [pad], axis=1)


# ------------------------------------ wrapper ---------------------------------------
def rqvae_forward(params, x, gumbel, gumbel_t):
    # Parameter-only precomputation + slab packing (in training these change only
    # at optimizer steps; doing them in the wrapper keeps the kernel prologue to
    # a handful of DMAs and the kernel free of redundant per-step work).
    ew0, eb0, ew1, eb1, ew2, eb2 = params["enc"]
    dw0, db0, dw1, db1, dw2, db2 = params["dec"]
    cb = params["codebooks"]                                   # (L, K, D)
    cbt = jnp.transpose(cb, (0, 2, 1))                         # (L, D, K)
    e2 = jnp.sum(cb * cb, axis=-1)                             # (L, K)

    named_f32 = {
        "ew0": ew0, "eb0": eb0, "ew1": ew1, "eb1": eb1, "ew2": ew2, "eb2": eb2,
        "db0": db0, "db1": db1, "db2": db2,
    }
    for l in range(N_LAYERS):
        named_f32[f"e2_{l}"] = e2[l:l + 1]
        named_f32[f"cbt_{l}"] = cbt[l]
        named_f32[f"cb_{l}"] = cb[l]
    f32_slab = _pack_slab(named_f32, _F32_SHAPES, _F32_ROWS,
                          _F32_ALIGN, _F32_WIDTH, jnp.float32)

    named_bf16 = {"dw0": dw0, "dw1": dw1, "dw2": dw2}
    bf16_slab = _pack_slab(named_bf16, _BF16_SHAPES, _BF16_ROWS,
                           _BF16_ALIGN, _BF16_WIDTH, jnp.bfloat16)

    # Runtime 1-D SMEM scalar 1/t -> multiply in kernel, no recompile on anneal.
    inv_t = jnp.full((1,), 1.0 / gumbel_t, jnp.float32)

    vmem = pl.BlockSpec(memory_space=pltpu.MemorySpace.VMEM)
    smem = pl.BlockSpec(memory_space=pltpu.MemorySpace.SMEM)

    packed = pl.pallas_call(
        rqvae_kernel,
        out_shape=jax.ShapeDtypeStruct((B, OUT_W), jnp.float32),
        in_specs=[smem, vmem, vmem, vmem, vmem],
        out_specs=vmem,
    )(inv_t, x, gumbel, f32_slab, bf16_slab)

    embs_norm = packed[:, 0:N_LAYERS]
    sem_ids = packed[:, N_LAYERS:2 * N_LAYERS].astype(jnp.int32)
    s = 2 * N_LAYERS

    # p_unique_ids is a torch.no_grad() all-pairs batch metric; computed here on
    # the (B, L) sem_ids output so the kernel stays row-tileable for scale-up.
    eq = jnp.all(sem_ids[:, None, :] == sem_ids[None, :, :], axis=-1)
    upper = jnp.triu(jnp.ones((B, B), bool), k=1)
    unique = ~jnp.any(eq & upper, axis=1)
    p_unique = jnp.sum(unique) / B

    return {
        "loss": packed[0, s + 0],
        "reconstruction_loss": packed[0, s + 1],
        "rqvae_loss": packed[0, s + 2],
        "p_unique_ids": p_unique,
        "embs_norm": embs_norm,
        "sem_ids": sem_ids,
    }


# ---------------- pure-JAX reference (mirrors the PyTorch forward) ----------------
def rqvae_reference(params, x, gumbel, gumbel_t):
    HI = jax.lax.Precision.HIGHEST
    ew0, eb0, ew1, eb1, ew2, eb2 = params["enc"]
    dw0, db0, dw1, db1, dw2, db2 = params["dec"]
    cbs = params["codebooks"]

    def silu(v):
        return v * (1.0 / (1.0 + jnp.exp(-v)))

    def l2n(v):
        return v / jnp.maximum(jnp.linalg.norm(v, axis=-1, keepdims=True), EPS)

    h = silu(jnp.dot(x, ew0, precision=HI) + eb0)
    h = silu(jnp.dot(h, ew1, precision=HI) + eb1)
    res = jnp.dot(h, ew2, precision=HI) + eb2

    rq_loss = jnp.zeros((B,), jnp.float32)
    embs, ids_all = [], []
    for l in range(N_LAYERS):
        cb, g = cbs[l], gumbel[l]
        dist = (jnp.sum(res * res, 1, keepdims=True) + jnp.sum(cb * cb, 1)[None, :]
                - 2.0 * jnp.dot(res, cb.T, precision=HI))
        ids_all.append(jnp.argmin(dist, axis=1).astype(jnp.int32))
        logits = (-dist + g) / gumbel_t
        logits = logits - jnp.max(logits, 1, keepdims=True)
        w = jnp.exp(logits)
        w = w / jnp.sum(w, 1, keepdims=True)
        emb = jnp.dot(w, cb, precision=HI)
        d2 = jnp.sum((emb - res) ** 2, axis=1)
        rq_loss = rq_loss + d2 + COMMIT_W * d2
        embs.append(emb)
        res = res - emb

    emb_stack = jnp.stack(embs, axis=-1)           # (B, D, L)
    sem_ids = jnp.stack(ids_all, axis=1)           # (B, L)
    emb_sum = emb_stack.sum(-1)

    h = silu(jnp.dot(emb_sum, dw0, precision=HI) + db0)
    h = silu(jnp.dot(h, dw1, precision=HI) + db1)
    x_hat = l2n(jnp.dot(h, dw2, precision=HI) + db2)
    x_hat = jnp.concatenate([l2n(x_hat[:, :-N_CAT]), x_hat[:, -N_CAT:]], axis=-1)

    mse = jnp.sum((x_hat[:, :-N_CAT] - x[:, :-N_CAT]) ** 2, axis=-1)
    z, y = x_hat[:, -N_CAT:], x[:, -N_CAT:]
    bce = jnp.sum(jnp.maximum(z, 0) - z * y + jnp.log(1.0 + jnp.exp(-jnp.abs(z))), axis=-1)
    recon = mse + bce

    eq = jnp.all(sem_ids[:, None, :] == sem_ids[None, :, :], axis=-1)
    upper = jnp.triu(jnp.ones((B, B), bool), k=1)
    unique = ~jnp.any(eq & upper, axis=1)
    return {
        "loss": jnp.mean(recon + rq_loss),
        "reconstruction_loss": jnp.mean(recon),
        "rqvae_loss": jnp.mean(rq_loss),
        "p_unique_ids": jnp.sum(unique) / B,
        "embs_norm": jnp.linalg.norm(emb_stack, axis=1),
        "sem_ids": sem_ids,
    }


def init_params(key):
    dims_enc = [INPUT_DIM] + list(HIDDEN_DIMS) + [EMBED_DIM]
    dims_dec = [EMBED_DIM] + list(HIDDEN_DIMS[::-1]) + [INPUT_DIM]
    keys = jax.random.split(key, 16)

    def linear(k, din, dout):
        kw, kb = jax.random.split(k)
        bound = 1.0 / (din ** 0.5)
        W = jax.random.uniform(kw, (din, dout), jnp.float32, -bound, bound)
        b = jax.random.uniform(kb, (1, dout), jnp.float32, -bound, bound)
        return W, b

    enc = []
    for i, (din, dout) in enumerate(zip(dims_enc[:-1], dims_enc[1:])):
        W, b = linear(keys[i], din, dout)
        enc += [W, b]
    dec = []
    for i, (din, dout) in enumerate(zip(dims_dec[:-1], dims_dec[1:])):
        W, b = linear(keys[4 + i], din, dout)
        dec += [W, b]
    codebooks = jax.random.normal(keys[8], (N_LAYERS, CODEBOOK_SIZE, EMBED_DIM),
                                  jnp.float32)
    return {"enc": tuple(enc), "dec": tuple(dec), "codebooks": codebooks}


if __name__ == "__main__":
    import numpy as np

    key = jax.random.PRNGKey(0)
    kp, kx, kc, kg = jax.random.split(key, 4)
    params = init_params(kp)

    x_dense = jax.random.normal(kx, (B, INPUT_DIM - N_CAT), jnp.float32)
    x_cat = jax.random.bernoulli(kc, 0.5, (B, N_CAT)).astype(jnp.float32)
    x = jnp.concatenate([x_dense, x_cat], axis=1)

    # deterministic Gumbel noise (host-side; same noise fed to kernel and reference)
    u = jax.random.uniform(kg, (N_LAYERS, B, CODEBOOK_SIZE), jnp.float32,
                           1e-6, 1.0 - 1e-6)
    gumbel = -jnp.log(-jnp.log(u))
    gumbel_t = 1.0

    out = rqvae_forward(params, x, gumbel, gumbel_t)
    out = jax.block_until_ready(out)
    ref = rqvae_reference(params, x, gumbel, gumbel_t)

    for name in ["loss", "reconstruction_loss", "rqvae_loss", "p_unique_ids", "embs_norm"]:
        np.testing.assert_allclose(np.asarray(out[name]), np.asarray(ref[name]),
                                   rtol=2e-2, atol=2e-2, err_msg=name)
    assert np.array_equal(np.asarray(out["sem_ids"]), np.asarray(ref["sem_ids"]))
    print("KERNEL_OK")
</pallas_src>

<mosaic_0001>
module attributes {stable_mosaic.version = 11 : i64} {
  func.func @rqvae_kernel(%arg0: memref<1xf32, #tpu.memory_space<smem>>, %arg1: memref<8x32xf32, #tpu.memory_space<vmem>>, %arg2: memref<3x8x64xf32, #tpu.memory_space<vmem>>, %arg3: memref<440x64xf32, #tpu.memory_space<vmem>>, %arg4: memref<112x64xbf16, #tpu.memory_space<vmem>>, %arg5: memref<8x128xf32, #tpu.memory_space<vmem>>) attributes {dimension_semantics = [], scalar_prefetch = 0 : i64, scratch_operands = 0 : i64, tpu.core_type = #tpu.core_type<tc>} {
    %c0 = arith.constant 0 : index
    %c0_0 = arith.constant 0 : index
    %0 = vector.load %arg1[%c0, %c0_0] : memref<8x32xf32, #tpu.memory_space<vmem>>, vector<8x32xf32>
    %c0_1 = arith.constant 0 : index
    %1 = memref.load %arg0[%c0_1] : memref<1xf32, #tpu.memory_space<smem>>
    %c0_2 = arith.constant 0 : index
    %c0_3 = arith.constant 0 : index
    %2 = vector.load %arg3[%c0_2, %c0_3] : memref<440x64xf32, #tpu.memory_space<vmem>>, vector<32x64xf32>
    %cst = arith.constant dense<0.000000e+00> : vector<8x64xf32>
    %3 = tpu.matmul %0, %2, %cst {dimension_numbers = #tpu.dot_dimension_numbers<[1], [0], [0], [1], [0, 0, 1, 1], [], []>} : vector<8x32xf32>, vector<32x64xf32>, vector<8x64xf32> -> vector<8x64xf32>
    %c32 = arith.constant 32 : index
    %c0_4 = arith.constant 0 : index
    %4 = vector.load %arg3[%c32, %c0_4] : memref<440x64xf32, #tpu.memory_space<vmem>>, vector<1x64xf32>
    %5 = vector.broadcast %4 : vector<1x64xf32> to vector<8x64xf32>
    %6 = arith.addf %3, %5 : vector<8x64xf32>
    %cst_5 = arith.constant 0.000000e+00 : f32
    %7 = vector.broadcast %cst_5 : f32 to vector<8x64xf32>
    %8 = arith.subf %7, %6 : vector<8x64xf32>
    %9 = math.exp %8 : vector<8x64xf32>
    %cst_6 = arith.constant 1.000000e+00 : f32
    %10 = vector.broadcast %cst_6 : f32 to vector<8x64xf32>
    %11 = arith.addf %10, %9 : vector<8x64xf32>
    %cst_7 = arith.constant 1.000000e+00 : f32
    %12 = vector.broadcast %cst_7 : f32 to vector<8x64xf32>
    %13 = arith.divf %12, %11 : vector<8x64xf32>
    %14 = arith.mulf %6, %13 : vector<8x64xf32>
    %c40 = arith.constant 40 : index
    %c0_8 = arith.constant 0 : index
    %15 = vector.load %arg3[%c40, %c0_8] : memref<440x64xf32, #tpu.memory_space<vmem>>, vector<64x32xf32>
    %cst_9 = arith.constant dense<0.000000e+00> : vector<8x32xf32>
    %16 = tpu.matmul %14, %15, %cst_9 {dimension_numbers = #tpu.dot_dimension_numbers<[1], [0], [0], [1], [0, 0, 1, 1], [], []>} : vector<8x64xf32>, vector<64x32xf32>, vector<8x32xf32> -> vector<8x32xf32>
    %c104 = arith.constant 104 : index
    %c0_10 = arith.constant 0 : index
    %17 = vector.load %arg3[%c104, %c0_10] : memref<440x64xf32, #tpu.memory_space<vmem>>, vector<1x32xf32>
    %18 = vector.broadcast %17 : vector<1x32xf32> to vector<8x32xf32>
    %19 = arith.addf %16, %18 : vector<8x32xf32>
    %cst_11 = arith.constant 0.000000e+00 : f32
    %20 = vector.broadcast %cst_11 : f32 to vector<8x32xf32>
    %21 = arith.subf %20, %19 : vector<8x32xf32>
    %22 = math.exp %21 : vector<8x32xf32>
    %cst_12 = arith.constant 1.000000e+00 : f32
    %23 = vector.broadcast %cst_12 : f32 to vector<8x32xf32>
    %24 = arith.addf %23, %22 : vector<8x32xf32>
    %cst_13 = arith.constant 1.000000e+00 : f32
    %25 = vector.broadcast %cst_13 : f32 to vector<8x32xf32>
    %26 = arith.divf %25, %24 : vector<8x32xf32>
    %27 = arith.mulf %19, %26 : vector<8x32xf32>
    %c112 = arith.constant 112 : index
    %c0_14 = arith.constant 0 : index
    %28 = vector.load %arg3[%c112, %c0_14] : memref<440x64xf32, #tpu.memory_space<vmem>>, vector<32x16xf32>
    %cst_15 = arith.constant dense<0.000000e+00> : vector<8x16xf32>
    %29 = tpu.matmul %27, %28, %cst_15 {dimension_numbers = #tpu.dot_dimension_numbers<[1], [0], [0], [1], [0, 0, 1, 1], [], []>} : vector<8x32xf32>, vector<32x16xf32>, vector<8x16xf32> -> vector<8x16xf32>
    %c144 = arith.constant 144 : index
    %c0_16 = arith.constant 0 : index
    %30 = vector.load %arg3[%c144, %c0_16] : memref<440x64xf32, #tpu.memory_space<vmem>>, vector<1x16xf32>
    %31 = vector.broadcast %30 : vector<1x16xf32> to vector<8x16xf32>
    %32 = arith.addf %29, %31 : vector<8x16xf32>
    %cst_17 = arith.constant 0.000000e+00 : f32
    %33 = vector.broadcast %cst_17 : f32 to vector<8x1xf32>
    %cst_18 = arith.constant 0.000000e+00 : f32
    %34 = vector.broadcast %cst_18 : f32 to vector<8x16xf32>
    %35 = tpu.iota {dimensions = array<i32: 1>} : vector<8x64xi32>
    %c184 = arith.constant 184 : index
    %c0_19 = arith.constant 0 : index
    %36 = vector.load %arg3[%c184, %c0_19] : memref<440x64xf32, #tpu.memory_space<vmem>>, vector<16x64xf32>
    %c200 = arith.constant 200 : index
    %c0_20 = arith.constant 0 : index
    %37 = vector.load %arg3[%c200, %c0_20] : memref<440x64xf32, #tpu.memory_space<vmem>>, vector<64x16xf32>
    %c176 = arith.constant 176 : index
    %c0_21 = arith.constant 0 : index
    %38 = vector.load %arg3[%c176, %c0_21] : memref<440x64xf32, #tpu.memory_space<vmem>>, vector<1x64xf32>
    %c0_22 = arith.constant 0 : index
    %c0_23 = arith.constant 0 : index
    %c0_24 = arith.constant 0 : index
    %39 = vector.load %arg2[%c0_22, %c0_23, %c0_24] : memref<3x8x64xf32, #tpu.memory_space<vmem>>, vector<1x8x64xf32>
    %40 = vector.shape_cast %39 : vector<1x8x64xf32> to vector<8x64xf32>
    %cst_25 = arith.constant dense<0.000000e+00> : vector<8x64xf32>
    %41 = tpu.matmul %32, %36, %cst_25 {dimension_numbers = #tpu.dot_dimension_numbers<[1], [0], [0], [1], [0, 0, 1, 1], [], []>} : vector<8x16xf32>, vector<16x64xf32>, vector<8x64xf32> -> vector<8x64xf32>
    %cst_26 = arith.constant 2.000000e+00 : f32
    %42 = vector.broadcast %cst_26 : f32 to vector<8x64xf32>
    %43 = arith.mulf %42, %41 : vector<8x64xf32>
    %44 = vector.broadcast %38 : vector<1x64xf32> to vector<8x64xf32>
    %45 = arith.subf %44, %43 : vector<8x64xf32>
    %cst_27 = arith.constant dense<0x7F800000> : vector<8xf32>
    %46 = vector.multi_reduction <minimumf>, %45, %cst_27 [1] : vector<8x64xf32> to vector<8xf32>
    %47 = vector.shape_cast %46 : vector<8xf32> to vector<8x1xf32>
    %48 = vector.broadcast %47 : vector<8x1xf32> to vector<8x64xf32>
    %49 = arith.cmpf ole, %45, %48 : vector<8x64xf32>
    %c64_i32 = arith.constant 64 : i32
    %50 = vector.broadcast %c64_i32 : i32 to vector<8x64xi32>
    %51 = arith.select %49, %35, %50 : vector<8x64xi1>, vector<8x64xi32>
    %cst_28 = arith.constant dense<2147483647> : vector<8xi32>
    %52 = vector.multi_reduction <minsi>, %51, %cst_28 [1] : vector<8x64xi32> to vector<8xi32>
    %53 = vector.shape_cast %52 : vector<8xi32> to vector<8x1xi32>
    %54 = arith.subf %40, %45 : vector<8x64xf32>
    %55 = vector.broadcast %1 : f32 to vector<8x64xf32>
    %56 = arith.mulf %54, %55 : vector<8x64xf32>
    %cst_29 = arith.constant dense<0xFF800000> : vector<8xf32>
    %57 = vector.multi_reduction <maximumf>, %56, %cst_29 [1] : vector<8x64xf32> to vector<8xf32>
    %58 = vector.shape_cast %57 : vector<8xf32> to vector<8x1xf32>
    %59 = vector.broadcast %58 : vector<8x1xf32> to vector<8x64xf32>
    %60 = arith.subf %56, %59 : vector<8x64xf32>
    %61 = math.exp %60 : vector<8x64xf32>
    %cst_30 = arith.constant dense<0.000000e+00> : vector<8xf32>
    %62 = vector.multi_reduction <add>, %61, %cst_30 [1] : vector<8x64xf32> to vector<8xf32>
    %63 = vector.shape_cast %62 : vector<8xf32> to vector<8x1xf32>
    %64 = vector.broadcast %63 : vector<8x1xf32> to vector<8x64xf32>
    %65 = arith.divf %61, %64 : vector<8x64xf32>
    %cst_31 = arith.constant dense<0.000000e+00> : vector<8x16xf32>
    %66 = tpu.matmul %65, %37, %cst_31 {dimension_numbers = #tpu.dot_dimension_numbers<[1], [0], [0], [1], [0, 0, 1, 1], [], []>} : vector<8x64xf32>, vector<64x16xf32>, vector<8x16xf32> -> vector<8x16xf32>
    %67 = arith.subf %66, %32 : vector<8x16xf32>
    %68 = arith.mulf %67, %67 : vector<8x16xf32>
    %cst_32 = arith.constant dense<0.000000e+00> : vector<8xf32>
    %69 = vector.multi_reduction <add>, %68, %cst_32 [1] : vector<8x16xf32> to vector<8xf32>
    %70 = vector.shape_cast %69 : vector<8xf32> to vector<8x1xf32>
    %cst_33 = arith.constant 1.250000e+00 : f32
    %71 = vector.broadcast %cst_33 : f32 to vector<8x1xf32>
    %72 = arith.mulf %71, %70 : vector<8x1xf32>
    %73 = arith.addf %33, %72 : vector<8x1xf32>
    %74 = arith.mulf %66, %66 : vector<8x16xf32>
    %cst_34 = arith.constant dense<0.000000e+00> : vector<8xf32>
    %75 = vector.multi_reduction <add>, %74, %cst_34 [1] : vector<8x16xf32> to vector<8xf32>
    %76 = vector.shape_cast %75 : vector<8xf32> to vector<8x1xf32>
    %77 = math.sqrt %76 : vector<8x1xf32>
    %78 = arith.addf %34, %66 : vector<8x16xf32>
    %79 = arith.subf %32, %66 : vector<8x16xf32>
    %c272 = arith.constant 272 : index
    %c0_35 = arith.constant 0 : index
    %80 = vector.load %arg3[%c272, %c0_35] : memref<440x64xf32, #tpu.memory_space<vmem>>, vector<16x64xf32>
    %c288 = arith.constant 288 : index
    %c0_36 = arith.constant 0 : index
    %81 = vector.load %arg3[%c288, %c0_36] : memref<440x64xf32, #tpu.memory_space<vmem>>, vector<64x16xf32>
    %c264 = arith.constant 264 : index
    %c0_37 = arith.constant 0 : index
    %82 = vector.load %arg3[%c264, %c0_37] : memref<440x64xf32, #tpu.memory_space<vmem>>, vector<1x64xf32>
    %c1 = arith.constant 1 : index
    %c0_38 = arith.constant 0 : index
    %c0_39 = arith.constant 0 : index
    %83 = vector.load %arg2[%c1, %c0_38, %c0_39] : memref<3x8x64xf32, #tpu.memory_space<vmem>>, vector<1x8x64xf32>
    %84 = vector.shape_cast %83 : vector<1x8x64xf32> to vector<8x64xf32>
    %cst_40 = arith.constant dense<0.000000e+00> : vector<8x64xf32>
    %85 = tpu.matmul %79, %80, %cst_40 {dimension_numbers = #tpu.dot_dimension_numbers<[1], [0], [0], [1], [0, 0, 1, 1], [], []>} : vector<8x16xf32>, vector<16x64xf32>, vector<8x64xf32> -> vector<8x64xf32>
    %cst_41 = arith.constant 2.000000e+00 : f32
    %86 = vector.broadcast %cst_41 : f32 to vector<8x64xf32>
    %87 = arith.mulf %86, %85 : vector<8x64xf32>
    %88 = vector.broadcast %82 : vector<1x64xf32> to vector<8x64xf32>
    %89 = arith.subf %88, %87 : vector<8x64xf32>
    %cst_42 = arith.constant dense<0x7F800000> : vector<8xf32>
    %90 = vector.multi_reduction <minimumf>, %89, %cst_42 [1] : vector<8x64xf32> to vector<8xf32>
    %91 = vector.shape_cast %90 : vector<8xf32> to vector<8x1xf32>
    %92 = vector.broadcast %91 : vector<8x1xf32> to vector<8x64xf32>
    %93 = arith.cmpf ole, %89, %92 : vector<8x64xf32>
    %c64_i32_43 = arith.constant 64 : i32
    %94 = vector.broadcast %c64_i32_43 : i32 to vector<8x64xi32>
    %95 = arith.select %93, %35, %94 : vector<8x64xi1>, vector<8x64xi32>
    %cst_44 = arith.constant dense<2147483647> : vector<8xi32>
    %96 = vector.multi_reduction <minsi>, %95, %cst_44 [1] : vector<8x64xi32> to vector<8xi32>
    %97 = vector.shape_cast %96 : vector<8xi32> to vector<8x1xi32>
    %98 = arith.subf %84, %89 : vector<8x64xf32>
    %99 = vector.broadcast %1 : f32 to vector<8x64xf32>
    %100 = arith.mulf %98, %99 : vector<8x64xf32>
    %cst_45 = arith.constant dense<0xFF800000> : vector<8xf32>
    %101 = vector.multi_reduction <maximumf>, %100, %cst_45 [1] : vector<8x64xf32> to vector<8xf32>
    %102 = vector.shape_cast %101 : vector<8xf32> to vector<8x1xf32>
    %103 = vector.broadcast %102 : vector<8x1xf32> to vector<8x64xf32>
    %104 = arith.subf %100, %103 : vector<8x64xf32>
    %105 = math.exp %104 : vector<8x64xf32>
    %cst_46 = arith.constant dense<0.000000e+00> : vector<8xf32>
    %106 = vector.multi_reduction <add>, %105, %cst_46 [1] : vector<8x64xf32> to vector<8xf32>
    %107 = vector.shape_cast %106 : vector<8xf32> to vector<8x1xf32>
    %108 = vector.broadcast %107 : vector<8x1xf32> to vector<8x64xf32>
    %109 = arith.divf %105, %108 : vector<8x64xf32>
    %cst_47 = arith.constant dense<0.000000e+00> : vector<8x16xf32>
    %110 = tpu.matmul %109, %81, %cst_47 {dimension_numbers = #tpu.dot_dimension_numbers<[1], [0], [0], [1], [0, 0, 1, 1], [], []>} : vector<8x64xf32>, vector<64x16xf32>, vector<8x16xf32> -> vector<8x16xf32>
    %111 = arith.subf %110, %79 : vector<8x16xf32>
    %112 = arith.mulf %111, %111 : vector<8x16xf32>
    %cst_48 = arith.constant dense<0.000000e+00> : vector<8xf32>
    %113 = vector.multi_reduction <add>, %112, %cst_48 [1] : vector<8x16xf32> to vector<8xf32>
    %114 = vector.shape_cast %113 : vector<8xf32> to vector<8x1xf32>
    %cst_49 = arith.constant 1.250000e+00 : f32
    %115 = vector.broadcast %cst_49 : f32 to vector<8x1xf32>
    %116 = arith.mulf %115, %114 : vector<8x1xf32>
    %117 = arith.addf %73, %116 : vector<8x1xf32>
    %118 = arith.mulf %110, %110 : vector<8x16xf32>
    %cst_50 = arith.constant dense<0.000000e+00> : vector<8xf32>
    %119 = vector.multi_reduction <add>, %118, %cst_50 [1] : vector<8x16xf32> to vector<8xf32>
    %120 = vector.shape_cast %119 : vector<8xf32> to vector<8x1xf32>
    %121 = math.sqrt %120 : vector<8x1xf32>
    %122 = arith.addf %78, %110 : vector<8x16xf32>
    %123 = arith.subf %79, %110 : vector<8x16xf32>
    %c360 = arith.constant 360 : index
    %c0_51 = arith.constant 0 : index
    %124 = vector.load %arg3[%c360, %c0_51] : memref<440x64xf32, #tpu.memory_space<vmem>>, vector<16x64xf32>
    %c376 = arith.constant 376 : index
    %c0_52 = arith.constant 0 : index
    %125 = vector.load %arg3[%c376, %c0_52] : memref<440x64xf32, #tpu.memory_space<vmem>>, vector<64x16xf32>
    %c352 = arith.constant 352 : index
    %c0_53 = arith.constant 0 : index
    %126 = vector.load %arg3[%c352, %c0_53] : memref<440x64xf32, #tpu.memory_space<vmem>>, vector<1x64xf32>
    %c2 = arith.constant 2 : index
    %c0_54 = arith.constant 0 : index
    %c0_55 = arith.constant 0 : index
    %127 = vector.load %arg2[%c2, %c0_54, %c0_55] : memref<3x8x64xf32, #tpu.memory_space<vmem>>, vector<1x8x64xf32>
    %128 = vector.shape_cast %127 : vector<1x8x64xf32> to vector<8x64xf32>
    %cst_56 = arith.constant dense<0.000000e+00> : vector<8x64xf32>
    %129 = tpu.matmul %123, %124, %cst_56 {dimension_numbers = #tpu.dot_dimension_numbers<[1], [0], [0], [1], [0, 0, 1, 1], [], []>} : vector<8x16xf32>, vector<16x64xf32>, vector<8x64xf32> -> vector<8x64xf32>
    %cst_57 = arith.constant 2.000000e+00 : f32
    %130 = vector.broadcast %cst_57 : f32 to vector<8x64xf32>
    %131 = arith.mulf %130, %129 : vector<8x64xf32>
    %132 = vector.broadcast %126 : vector<1x64xf32> to vector<8x64xf32>
    %133 = arith.subf %132, %131 : vector<8x64xf32>
    %cst_58 = arith.constant dense<0x7F800000> : vector<8xf32>
    %134 = vector.multi_reduction <minimumf>, %133, %cst_58 [1] : vector<8x64xf32> to vector<8xf32>
    %135 = vector.shape_cast %134 : vector<8xf32> to vector<8x1xf32>
    %136 = vector.broadcast %135 : vector<8x1xf32> to vector<8x64xf32>
    %137 = arith.cmpf ole, %133, %136 : vector<8x64xf32>
    %c64_i32_59 = arith.constant 64 : i32
    %138 = vector.broadcast %c64_i32_59 : i32 to vector<8x64xi32>
    %139 = arith.select %137, %35, %138 : vector<8x64xi1>, vector<8x64xi32>
    %cst_60 = arith.constant dense<2147483647> : vector<8xi32>
    %140 = vector.multi_reduction <minsi>, %139, %cst_60 [1] : vector<8x64xi32> to vector<8xi32>
    %141 = vector.shape_cast %140 : vector<8xi32> to vector<8x1xi32>
    %142 = arith.subf %128, %133 : vector<8x64xf32>
    %143 = vector.broadcast %1 : f32 to vector<8x64xf32>
    %144 = arith.mulf %142, %143 : vector<8x64xf32>
    %cst_61 = arith.constant dense<0xFF800000> : vector<8xf32>
    %145 = vector.multi_reduction <maximumf>, %144, %cst_61 [1] : vector<8x64xf32> to vector<8xf32>
    %146 = vector.shape_cast %145 : vector<8xf32> to vector<8x1xf32>
    %147 = vector.broadcast %146 : vector<8x1xf32> to vector<8x64xf32>
    %148 = arith.subf %144, %147 : vector<8x64xf32>
    %149 = math.exp %148 : vector<8x64xf32>
    %cst_62 = arith.constant dense<0.000000e+00> : vector<8xf32>
    %150 = vector.multi_reduction <add>, %149, %cst_62 [1] : vector<8x64xf32> to vector<8xf32>
    %151 = vector.shape_cast %150 : vector<8xf32> to vector<8x1xf32>
    %152 = vector.broadcast %151 : vector<8x1xf32> to vector<8x64xf32>
    %153 = arith.divf %149, %152 : vector<8x64xf32>
    %cst_63 = arith.constant dense<0.000000e+00> : vector<8x16xf32>
    %154 = tpu.matmul %153, %125, %cst_63 {dimension_numbers = #tpu.dot_dimension_numbers<[1], [0], [0], [1], [0, 0, 1, 1], [], []>} : vector<8x64xf32>, vector<64x16xf32>, vector<8x16xf32> -> vector<8x16xf32>
    %155 = arith.subf %154, %123 : vector<8x16xf32>
    %156 = arith.mulf %155, %155 : vector<8x16xf32>
    %cst_64 = arith.constant dense<0.000000e+00> : vector<8xf32>
    %157 = vector.multi_reduction <add>, %156, %cst_64 [1] : vector<8x16xf32> to vector<8xf32>
    %158 = vector.shape_cast %157 : vector<8xf32> to vector<8x1xf32>
    %cst_65 = arith.constant 1.250000e+00 : f32
    %159 = vector.broadcast %cst_65 : f32 to vector<8x1xf32>
    %160 = arith.mulf %159, %158 : vector<8x1xf32>
    %161 = arith.addf %117, %160 : vector<8x1xf32>
    %162 = arith.mulf %154, %154 : vector<8x16xf32>
    %cst_66 = arith.constant dense<0.000000e+00> : vector<8xf32>
    %163 = vector.multi_reduction <add>, %162, %cst_66 [1] : vector<8x16xf32> to vector<8xf32>
    %164 = vector.shape_cast %163 : vector<8xf32> to vector<8x1xf32>
    %165 = math.sqrt %164 : vector<8x1xf32>
    %166 = arith.addf %122, %154 : vector<8x16xf32>
    %167 = arith.truncf %166 : vector<8x16xf32> to vector<8x16xbf16>
    %c0_67 = arith.constant 0 : index
    %c0_68 = arith.constant 0 : index
    %168 = vector.load %arg4[%c0_67, %c0_68] : memref<112x64xbf16, #tpu.memory_space<vmem>>, vector<16x32xbf16>
    %cst_69 = arith.constant dense<0.000000e+00> : vector<8x32xf32>
    %169 = tpu.matmul %167, %168, %cst_69 {dimension_numbers = #tpu.dot_dimension_numbers<[1], [0], [0], [1], [0, 0, 1, 1], [], []>} : vector<8x16xbf16>, vector<16x32xbf16>, vector<8x32xf32> -> vector<8x32xf32>
    %c152 = arith.constant 152 : index
    %c0_70 = arith.constant 0 : index
    %170 = vector.load %arg3[%c152, %c0_70] : memref<440x64xf32, #tpu.memory_space<vmem>>, vector<1x32xf32>
    %171 = vector.broadcast %170 : vector<1x32xf32> to vector<8x32xf32>
    %172 = arith.addf %169, %171 : vector<8x32xf32>
    %cst_71 = arith.constant 0.000000e+00 : f32
    %173 = vector.broadcast %cst_71 : f32 to vector<8x32xf32>
    %174 = arith.subf %173, %172 : vector<8x32xf32>
    %175 = math.exp %174 : vector<8x32xf32>
    %cst_72 = arith.constant 1.000000e+00 : f32
    %176 = vector.broadcast %cst_72 : f32 to vector<8x32xf32>
    %177 = arith.addf %176, %175 : vector<8x32xf32>
    %178 = tpu.reciprocal %177 {approx = true} : vector<8x32xf32> -> vector<8x32xf32>
    %179 = arith.mulf %172, %178 : vector<8x32xf32>
    %180 = arith.truncf %179 : vector<8x32xf32> to vector<8x32xbf16>
    %c16 = arith.constant 16 : index
    %c0_73 = arith.constant 0 : index
    %181 = vector.load %arg4[%c16, %c0_73] : memref<112x64xbf16, #tpu.memory_space<vmem>>, vector<32x64xbf16>
    %cst_74 = arith.constant dense<0.000000e+00> : vector<8x64xf32>
    %182 = tpu.matmul %180, %181, %cst_74 {dimension_numbers = #tpu.dot_dimension_numbers<[1], [0], [0], [1], [0, 0, 1, 1], [], []>} : vector<8x32xbf16>, vector<32x64xbf16>, vector<8x64xf32> -> vector<8x64xf32>
    %c160 = arith.constant 160 : index
    %c0_75 = arith.constant 0 : index
    %183 = vector.load %arg3[%c160, %c0_75] : memref<440x64xf32, #tpu.memory_space<vmem>>, vector<1x64xf32>
    %184 = vector.broadcast %183 : vector<1x64xf32> to vector<8x64xf32>
    %185 = arith.addf %182, %184 : vector<8x64xf32>
    %cst_76 = arith.constant 0.000000e+00 : f32
    %186 = vector.broadcast %cst_76 : f32 to vector<8x64xf32>
    %187 = arith.subf %186, %185 : vector<8x64xf32>
    %188 = math.exp %187 : vector<8x64xf32>
    %cst_77 = arith.constant 1.000000e+00 : f32
    %189 = vector.broadcast %cst_77 : f32 to vector<8x64xf32>
    %190 = arith.addf %189, %188 : vector<8x64xf32>
    %191 = tpu.reciprocal %190 {approx = true} : vector<8x64xf32> -> vector<8x64xf32>
    %192 = arith.mulf %185, %191 : vector<8x64xf32>
    %193 = arith.truncf %192 : vector<8x64xf32> to vector<8x64xbf16>
    %c48 = arith.constant 48 : index
    %c0_78 = arith.constant 0 : index
    %194 = vector.load %arg4[%c48, %c0_78] : memref<112x64xbf16, #tpu.memory_space<vmem>>, vector<64x32xbf16>
    %cst_79 = arith.constant dense<0.000000e+00> : vector<8x32xf32>
    %195 = tpu.matmul %193, %194, %cst_79 {dimension_numbers = #tpu.dot_dimension_numbers<[1], [0], [0], [1], [0, 0, 1, 1], [], []>} : vector<8x64xbf16>, vector<64x32xbf16>, vector<8x32xf32> -> vector<8x32xf32>
    %c168 = arith.constant 168 : index
    %c0_80 = arith.constant 0 : index
    %196 = vector.load %arg3[%c168, %c0_80] : memref<440x64xf32, #tpu.memory_space<vmem>>, vector<1x32xf32>
    %197 = vector.broadcast %196 : vector<1x32xf32> to vector<8x32xf32>
    %198 = arith.addf %195, %197 : vector<8x32xf32>
    %199 = arith.mulf %198, %198 : vector<8x32xf32>
    %cst_81 = arith.constant dense<0.000000e+00> : vector<8xf32>
    %200 = vector.multi_reduction <add>, %199, %cst_81 [1] : vector<8x32xf32> to vector<8xf32>
    %201 = vector.shape_cast %200 : vector<8xf32> to vector<8x1xf32>
    %cst_82 = arith.constant 1.000000e-24 : f32
    %202 = vector.broadcast %cst_82 : f32 to vector<8x1xf32>
    %203 = arith.maximumf %201, %202 : vector<8x1xf32>
    %204 = math.rsqrt %203 : vector<8x1xf32>
    %205 = vector.broadcast %204 : vector<8x1xf32> to vector<8x32xf32>
    %206 = arith.mulf %198, %205 : vector<8x32xf32>
    %207 = vector.extract_strided_slice %206 {offsets = [0, 0], sizes = [8, 28], strides = [1, 1]} : vector<8x32xf32> to vector<8x28xf32>
    %208 = arith.mulf %207, %207 : vector<8x28xf32>
    %cst_83 = arith.constant dense<0.000000e+00> : vector<8xf32>
    %209 = vector.multi_reduction <add>, %208, %cst_83 [1] : vector<8x28xf32> to vector<8xf32>
    %210 = vector.shape_cast %209 : vector<8xf32> to vector<8x1xf32>
    %cst_84 = arith.constant 1.000000e-24 : f32
    %211 = vector.broadcast %cst_84 : f32 to vector<8x1xf32>
    %212 = arith.maximumf %210, %211 : vector<8x1xf32>
    %213 = math.rsqrt %212 : vector<8x1xf32>
    %214 = vector.broadcast %213 : vector<8x1xf32> to vector<8x28xf32>
    %215 = arith.mulf %207, %214 : vector<8x28xf32>
    %216 = vector.extract_strided_slice %206 {offsets = [0, 28], sizes = [8, 4], strides = [1, 1]} : vector<8x32xf32> to vector<8x4xf32>
    %217 = vector.extract_strided_slice %0 {offsets = [0, 0], sizes = [8, 28], strides = [1, 1]} : vector<8x32xf32> to vector<8x28xf32>
    %218 = vector.extract_strided_slice %0 {offsets = [0, 28], sizes = [8, 4], strides = [1, 1]} : vector<8x32xf32> to vector<8x4xf32>
    %219 = arith.subf %215, %217 : vector<8x28xf32>
    %220 = arith.mulf %219, %219 : vector<8x28xf32>
    %cst_85 = arith.constant dense<0.000000e+00> : vector<8xf32>
    %221 = vector.multi_reduction <add>, %220, %cst_85 [1] : vector<8x28xf32> to vector<8xf32>
    %222 = vector.shape_cast %221 : vector<8xf32> to vector<8x1xf32>
    %cst_86 = arith.constant 0.000000e+00 : f32
    %223 = vector.broadcast %cst_86 : f32 to vector<8x4xf32>
    %224 = arith.maximumf %216, %223 : vector<8x4xf32>
    %225 = arith.mulf %216, %218 : vector<8x4xf32>
    %226 = arith.subf %224, %225 : vector<8x4xf32>
    %227 = math.absf %216 : vector<8x4xf32>
    %cst_87 = arith.constant 0.000000e+00 : f32
    %228 = vector.broadcast %cst_87 : f32 to vector<8x4xf32>
    %229 = arith.subf %228, %227 : vector<8x4xf32>
    %230 = math.exp %229 : vector<8x4xf32>
    %cst_88 = arith.constant 1.000000e+00 : f32
    %231 = vector.broadcast %cst_88 : f32 to vector<8x4xf32>
    %232 = arith.addf %231, %230 : vector<8x4xf32>
    %233 = math.log %232 : vector<8x4xf32>
    %234 = arith.addf %226, %233 : vector<8x4xf32>
    %cst_89 = arith.constant dense<0.000000e+00> : vector<8xf32>
    %235 = vector.multi_reduction <add>, %234, %cst_89 [1] : vector<8x4xf32> to vector<8xf32>
    %236 = vector.shape_cast %235 : vector<8xf32> to vector<8x1xf32>
    %237 = arith.addf %222, %236 : vector<8x1xf32>
    %238 = arith.addf %237, %161 : vector<8x1xf32>
    %cst_90 = arith.constant dense<0.000000e+00> : vector<1xf32>
    %239 = vector.multi_reduction <add>, %238, %cst_90 [0] : vector<8x1xf32> to vector<1xf32>
    %240 = vector.shape_cast %239 : vector<1xf32> to vector<1x1xf32>
    %cst_91 = arith.constant 1.250000e-01 : f32
    %241 = vector.broadcast %cst_91 : f32 to vector<1x1xf32>
    %242 = arith.mulf %240, %241 : vector<1x1xf32>
    %cst_92 = arith.constant dense<0.000000e+00> : vector<1xf32>
    %243 = vector.multi_reduction <add>, %237, %cst_92 [0] : vector<8x1xf32> to vector<1xf32>
    %244 = vector.shape_cast %243 : vector<1xf32> to vector<1x1xf32>
    %cst_93 = arith.constant 1.250000e-01 : f32
    %245 = vector.broadcast %cst_93 : f32 to vector<1x1xf32>
    %246 = arith.mulf %244, %245 : vector<1x1xf32>
    %cst_94 = arith.constant dense<0.000000e+00> : vector<1xf32>
    %247 = vector.multi_reduction <add>, %161, %cst_94 [0] : vector<8x1xf32> to vector<1xf32>
    %248 = vector.shape_cast %247 : vector<1xf32> to vector<1x1xf32>
    %cst_95 = arith.constant 1.250000e-01 : f32
    %249 = vector.broadcast %cst_95 : f32 to vector<1x1xf32>
    %250 = arith.mulf %248, %249 : vector<1x1xf32>
    %251 = arith.sitofp %53 : vector<8x1xi32> to vector<8x1xf32>
    %252 = arith.sitofp %97 : vector<8x1xi32> to vector<8x1xf32>
    %253 = arith.sitofp %141 : vector<8x1xi32> to vector<8x1xf32>
    %254 = vector.shape_cast %242 : vector<1x1xf32> to vector<1x1xf32>
    %255 = vector.broadcast %254 : vector<1x1xf32> to vector<8x1xf32>
    %256 = vector.shape_cast %246 : vector<1x1xf32> to vector<1x1xf32>
    %257 = vector.broadcast %256 : vector<1x1xf32> to vector<8x1xf32>
    %258 = vector.shape_cast %250 : vector<1x1xf32> to vector<1x1xf32>
    %259 = vector.broadcast %258 : vector<1x1xf32> to vector<8x1xf32>
    %cst_96 = arith.constant 0.000000e+00 : f32
    %260 = vector.broadcast %cst_96 : f32 to vector<8x119xf32>
    %261 = tpu.concatenate %77, %121, %165, %251, %252, %253, %255, %257, %259, %260 in 1 : vector<8x1xf32>, vector<8x1xf32>, vector<8x1xf32>, vector<8x1xf32>, vector<8x1xf32>, vector<8x1xf32>, vector<8x1xf32>, vector<8x1xf32>, vector<8x1xf32>, vector<8x119xf32> -> vector<8x128xf32>
    %c0_97 = arith.constant 0 : index
    %c0_98 = arith.constant 0 : index
    %262 = vector.load %arg5[%c0_97, %c0_98] : memref<8x128xf32, #tpu.memory_space<vmem>>, vector<8x128xf32>
    tpu.vector_store %arg5[%c0_97, %c0_98], %261 {strides = array<i32>} : memref<8x128xf32, #tpu.memory_space<vmem>>, vector<8x128xf32>,
    return
  }
}

</mosaic_0001>

<bundles_post_ra>
// kernel: tpu_custom_call.1
= control target key start
LH: loop header
LB: loop body
LE: loop exit
PB: predicated region body
PF: predicated region fallthrough
CT: control target
= control target key end

     0   :  { %v1574_v1 = vmov 0.0   ;;  %vm1575_vm0 = vmmov 0   ;;  %vm34_vm1 = vcmask 261120   ;;  %s2002_s0 = inlined_call_operand.<no memory space> [shape: f32[1], index: 0, kind: input, shape index: {}]   ;;  %s2003_s1 = inlined_call_operand.vmem [shape: f32[8,32], index: 1, kind: input, shape index: {}]   ;;  %s2004_s2 = inlined_call_operand.vmem [shape: f32[3,8,64], index: 2, kind: input, shape index: {}]   ;;  %s2005_s3 = inlined_call_operand.vmem [shape: f32[440,64], index: 3, kind: input, shape index: {}]   ;;  %s2006_s4 = inlined_call_operand.vmem [shape: bf16[112,64], index: 4, kind: input, shape index: {}]   ;;  %s2007_s5 = inlined_call_operand.hbm [shape: f32[8,128], index: 5, kind: output, shape index: {}]  }
   0x1   :  { %v28_v0 = vld [vmem:[%s2005_s3 + $0x18] sm:$0xff]  ;;  %1354 = vmatprep.subr.mxu1 %v1574_v1  ;;  %v27_v2 = vld [vmem:[%s2005_s3 + $0x10] sm:$0xff]  ;;  %v26_v3 = vld [vmem:[%s2005_s3 + $0x8] sm:$0xff]  ;;  %1362 = vmatprep.mubr.msk.f32.mxu1 %vm1575_vm0, %v1574_v1 }
   0x2   :  { %1355 = vmatpush3.msra.mxu1 %v28_v0  ;;  %1384 = vmatprep.subr.mxu0 %v1574_v1  ;;  %v25_v4 = vld [vmem:[%s2005_s3] sm:$0xff] }
   0x3   :  { %1356 = vmatprep.subr.mxu1 %v1574_v1  ;;  %1392 = vmatprep.mubr.msk.f32.mxu0 %vm1575_vm0, %v1574_v1  ;;  %v1630_v5 = vld [vmem:[%s2003_s1] sm:$0xff] }
   0x4   :  { %1357 = vmatpush3.msra.mxu1 %v27_v2 }
   0x5   :  { %1358 = vmatprep.subr.mxu1 %v1574_v1 }
   0x6   :  { %1359 = vmatpush3.msra.mxu1 %v26_v3 }
   0x7   :  { %11 = vsyncpa [#allocation4], 0  ;;  %1360 = vmatprep.subr.mxu1 %v1574_v1  ;;  %v122_v6 = vld [vmem:[%s2005_s3 + $0x60] sm:$0xff]  ;;  %v121_v7 = vld [vmem:[%s2005_s3 + $0x58] sm:$0xff]  ;;  %vm128_vm2 = vcmask 523264   ;;  %vm305_vm3 = vcmask 130048   ;;  %v1727_v50 = vstv %s2002_s0 }
   0x8   :  { %1361 = vmatpush3.msra.mxu1 %v25_v4  ;;  %v120_v8 = vld [vmem:[%s2005_s3 + $0x50] sm:$0xff]  ;;  %v119_v9 = vld [vmem:[%s2005_s3 + $0x48] sm:$0xff]  ;;  %v118_v10 = vld [vmem:[%s2005_s3 + $0x40] sm:$0xff]  ;;  %vm1170_vm7 = vcmask 228352   ;;  %vm1197_vm8 = vcmask 31744   ;;  %vm1227_vm13 = vcmask 7168  }
   0x9   :  { %1363 = vmatmul.mubr.msk.f32.vlgmr.msra.gmra.mxu1 %vm34_vm1, %v1630_v5  ;;  %1365 = vmatprep.subr.mxu1 %v1574_v1  ;;  %v117_v11 = vld [vmem:[%s2005_s3 + $0x38] sm:$0xff]  ;;  %v116_v12 = vld [vmem:[%s2005_s3 + $0x30] sm:$0xff]  ;;  %v115_v13 = vld [vmem:[%s2005_s3 + $0x28] sm:$0xff]  ;;  %s1577_s16 = smov [#allocation3]  }
   0xa   :  { %1381 = vmatprep.mubr.msk.f32.mxu1 %vm1575_vm0, %v1574_v1  ;;  %1366 = vmatpush3.msra.mxu1 %v122_v6  ;;  %v1259_v14 = vld [vmem:[%s2005_s3 + $0x20] ss:$0 sm:$0xff]  ;;  %v212_v24 = vld [vmem:[%s2005_s3 + $0x88] sm:$0xff]  ;;  %v210_v26 = vld [vmem:[%s2005_s3 + $0x78] sm:$0xff]  ;;  %s1251_s17 = sshll.u32 %s1577_s16, 4  ;;  %s1252_s17 = int_to_ptr.vmem [resolvable:$true] %s1251_s17 }
   0xb   :  { %1367 = vmatprep.subr.mxu1 %v1574_v1  ;;  %1385 = vmatpush3.msra.mxu0 %v212_v24  ;;  %v211_v25 = vld [vmem:[%s2005_s3 + $0x80] sm:$0xff]  ;;  %v209_v27 = vld [vmem:[%s2005_s3 + $0x70] sm:$0xff]  ;;  %v1261_v28 = vld [vmem:[%s2005_s3 + $0x68] ss:$0 sm:$0xff]  ;;  %s1552_s0 = scalar_lea.vmem %s1252_s17, 128  ;;  %p1557_p1 = scmp.lt.s32.totalorder %s1252_s17, %s1252_s17 }
   0xc   :  { %1368 = vmatpush3.msra.mxu1 %v121_v7  ;;  %1386 = vmatprep.subr.mxu0 %v1574_v1  ;;  %v294_v38 = vld [vmem:[%s2005_s3 + $0xc0] sm:$0xff]  ;;  %v293_v39 = vld [vmem:[%s2005_s3 + $0xb8] sm:$0xff]  ;;  %v1263_v40 = vld [vmem:[%s2005_s3 + $0x90] ss:$0 sm:$0xff]  ;;  %p1553_p0 = scmp.ne.s32.totalorder %s1252_s17, %s1552_s0  ;;  %p1558_p2 = scmp.lt.s32.totalorder %s1552_s0, %s1552_s0 }
   0xd   :  { %1369 = vmatprep.subr.mxu1 %v1574_v1  ;;  %1387 = vmatpush3.msra.mxu0 %v211_v25  ;;  %v1266_v44 = vld [vmem:[%s2005_s3 + $0xb0] ss:$0 sm:$0xff]  ;;  %v304_v48 = vld [vmem:[%s2004_s2] sm:$0xff]  ;;  %v301_v60 = vld [vmem:[%s2005_s3 + $0xf8] sm:$0xff] }
   0xe   :  { %1370 = vmatpush3.msra.mxu1 %v120_v8  ;;  %1388 = vmatprep.subr.mxu0 %v1574_v1  ;;  %v302_v59 = vld [vmem:[%s2005_s3 + $0x100] sm:$0xff]  ;;  %v300_v61 = vld [vmem:[%s2005_s3 + $0xf0] sm:$0xff]  ;;  %v299_v62 = vld [vmem:[%s2005_s3 + $0xe8] sm:$0xff]  ;;  %p1559_p3 = por %p1558_p2, %p1557_p1 }
   0xf   :  { %1371 = vmatprep.subr.mxu1 %v1574_v1  ;;  %1389 = vmatpush3.msra.mxu0 %v210_v26  ;;  %v298_v63 = vld [vmem:[%s2005_s3 + $0xe0] sm:$0xff]  ;;  %v297_v0 = vld [vmem:[%s2005_s3 + $0xd8] sm:$0xff]  ;;  %v296_v2 = vld [vmem:[%s2005_s3 + $0xd0] sm:$0xff] }
  0x10   :  { %1372 = vmatpush3.msra.mxu1 %v119_v9  ;;  %1390 = vmatprep.subr.mxu0 %v1574_v1  ;;  %v295_v3 = vld [vmem:[%s2005_s3 + $0xc8] sm:$0xff]  ;;  %v513_v4 = vld [vmem:[%s2005_s3 + $0x118] sm:$0xff]  ;;  %v512_v9 = vld [vmem:[%s2005_s3 + $0x110] sm:$0xff]  ;;  %p1560_p4 = pnand %p1559_p3, %p1553_p0 }
  0x11   :  { %1373 = vmatprep.subr.mxu1 %v1574_v1  ;;  %1391 = vmatpush3.msra.mxu0 %v209_v27  ;;  %v521_v27 = vld [vmem:[%s2005_s3 + $0x158] sm:$0xff] }
  0x12   :  { %1374 = vmatpush3.msra.mxu1 %v118_v10  ;;  %1395 = vmatprep.subr.mxu0 %v1574_v1 }
  0x13   :  { %1375 = vmatprep.subr.mxu1 %v1574_v1 }
  0x14   :  { %1376 = vmatpush3.msra.mxu1 %v117_v11 }
  0x15   :  { %1377 = vmatprep.subr.mxu1 %v1574_v1 }
  0x16   :  { %1378 = vmatpush3.msra.mxu1 %v116_v12 }
  0x17   :  { %1379 = vmatprep.subr.mxu1 %v1574_v1 }
  0x18   :  { %1380 = vmatpush3.msra.mxu1 %v115_v13  ;;  %v1270_v13 = vld [vmem:[%s2005_s3 + $0x108] ss:$0 sm:$0xff] }
  0x19   :  { %1402 = vmatprep.subr.mxu1 %v1574_v1 }
  0xc9   :  { %v104_v15 = vpop.f32.mrf.mxu1 }
  0xca   :  { %v105_v16 = vadd.f32 %v1259_v14, %v104_v15 }
  0xcb   :  { %v1364_v17 = vpop.f32.mrf.mxu1 }
  0xcc   :  { %v108_v18 = vsub.f32 0.0, %v105_v16  ;;  %v1268_v17 = vld [vmem:[%s2004_s2 + $0x8] sm:$0xff] }
  0xce   :  { %v109_v19 = vmul.f32 1.442695, %v108_v18 }
  0xd0   :  { %1510 = vpow2.f32 %v109_v19 }
  0xdd   :  { %v1511_v20 = vpop.eup %1510 }
  0xde   :  { %v111_v21 = vadd.f32 1.0, %v1511_v20 }
  0xe0   :  { %1512 = vrcp.f32 %v111_v21 }
  0xed   :  { %v1513_v22 = vpop.eup %1512 }
  0xee   :  { %v114_v23 = vmul.f32 %v1513_v22, %v105_v16 }
  0xf0   :  { %1382 = vmatmul.mubr.msk.f32.vlgmr.msra.gmra.mxu1 %vm128_vm2, %v114_v23 }
  0xf1   :  { %1418 = vmatprep.mubr.msk.f32.mxu1 %vm1575_vm0, %v1574_v1  ;;  %1403 = vmatpush3.msra.mxu1 %v302_v59 }
  0xf2   :  { %1404 = vmatprep.subr.mxu1 %v1574_v1 }
  0xf3   :  { %1405 = vmatpush3.msra.mxu1 %v301_v60 }
  0xf4   :  { %1406 = vmatprep.subr.mxu1 %v1574_v1 }
  0xf5   :  { %1407 = vmatpush3.msra.mxu1 %v300_v61 }
  0xf6   :  { %1408 = vmatprep.subr.mxu1 %v1574_v1 }
  0xf7   :  { %1409 = vmatpush3.msra.mxu1 %v299_v62  ;;  %v738_v62 = vld [vmem:[%s2005_s3 + $0x1a8] sm:$0xff] }
  0xf8   :  { %1410 = vmatprep.subr.mxu1 %v1574_v1 }
  0xf9   :  { %1411 = vmatpush3.msra.mxu1 %v298_v63  ;;  %v737_v63 = vld [vmem:[%s2005_s3 + $0x1a0] sm:$0xff] }
  0xfa   :  { %1412 = vmatprep.subr.mxu1 %v1574_v1 }
  0xfb   :  { %1413 = vmatpush3.msra.mxu1 %v297_v0  ;;  %v736_v0 = vld [vmem:[%s2005_s3 + $0x198] sm:$0xff] }
  0xfc   :  { %1414 = vmatprep.subr.mxu1 %v1574_v1 }
  0xfd   :  { %1415 = vmatpush3.msra.mxu1 %v296_v2  ;;  %v735_v2 = vld [vmem:[%s2005_s3 + $0x190] sm:$0xff] }
  0xfe   :  { %1416 = vmatprep.subr.mxu1 %v1574_v1 }
  0xff   :  { %1417 = vmatpush3.msra.mxu1 %v295_v3  ;;  %v734_v3 = vld [vmem:[%s2005_s3 + $0x188] sm:$0xff] }
 0x100   :  { %1447 = vmatprep.subr.mxu1 %v1574_v1 }
 0x1b0   :  { %v198_v29 = vpop.f32.mrf.mxu1 }
 0x1b1   :  { %v199_v30 = vadd.f32 %v1261_v28, %v198_v29  ;;  %v520_v28 = vld [vmem:[%s2005_s3 + $0x150] sm:$0xff]  ;;  %v519_v29 = vld [vmem:[%s2005_s3 + $0x148] sm:$0xff] }
 0x1b2   :  { %v1383_v31 = vpop.f32.mrf.mxu1 }
 0x1b3   :  { %v202_v32 = vsub.f32 0.0, %v199_v30  ;;  %v517_v31 = vld [vmem:[%s2005_s3 + $0x138] sm:$0xff] }
 0x1b5   :  { %v203_v33 = vmul.f32 1.442695, %v202_v32  ;;  %v516_v32 = vld [vmem:[%s2005_s3 + $0x130] sm:$0xff] }
 0x1b7   :  { %1514 = vpow2.f32 %v203_v33  ;;  %v515_v33 = vld [vmem:[%s2005_s3 + $0x128] sm:$0xff] }
 0x1c4   :  { %v1515_v34 = vpop.eup %1514 }
 0x1c5   :  { %v205_v35 = vadd.f32 1.0, %v1515_v34  ;;  %v514_v34 = vld [vmem:[%s2005_s3 + $0x120] sm:$0xff] }
 0x1c7   :  { %1516 = vrcp.f32 %v205_v35  ;;  %v731_v35 = vld [vmem:[%s2005_s3 + $0x170] sm:$0xff] }
 0x1d4   :  { %v1517_v36 = vpop.eup %1516 }
 0x1d5   :  { %v208_v37 = vmul.f32 %v1517_v36, %v199_v30  ;;  %v518_v30 = vld [vmem:[%s2005_s3 + $0x140] sm:$0xff] }
 0x1d7   :  { %1393 = vmatmul.mubr.msk.f32.vlgmr.msra.gmra.mxu0 %vm34_vm1, %v208_v37 }
 0x1d8   :  { %1396 = vmatpush3.msra.mxu0 %v294_v38  ;;  %1399 = vmatprep.mubr.msk.f32.mxu0 %vm1575_vm0, %v1574_v1 }
 0x1d9   :  { %1397 = vmatprep.subr.mxu0 %v1574_v1 }
 0x1da   :  { %1398 = vmatpush3.msra.mxu0 %v293_v39  ;;  %v730_v39 = vld [vmem:[%s2005_s3 + $0x168] sm:$0xff] }
 0x1db   :  { %1421 = vmatprep.subr.mxu0 %v1574_v1 }
 0x297   :  { %v287_v41 = vpop.f32.mrf.mxu0 }
 0x298   :  { %v1710_v42 = vadd.f32 %v1263_v40, %v287_v41 }
 0x299   :  { %v1394_v43 = vpop.f32.mrf.mxu0 }
 0x29a   :  { %1400 = vmatmul.mubr.msk.f32.vlgmr.msra.gmra.mxu0 %vm305_vm3, %v1710_v42 }
 0x29b   :  { %1425 = vmatprep.mubr.msk.f32.mxu0 %vm1575_vm0, %v1574_v1  ;;  %1422 = vmatpush3.msra.mxu0 %v513_v4  ;;  %v733_v4 = vld [vmem:[%s2005_s3 + $0x180] sm:$0xff] }
 0x29c   :  { %1423 = vmatprep.subr.mxu0 %v1574_v1 }
 0x29d   :  { %1424 = vmatpush3.msra.mxu0 %v512_v9 }
 0x29e   :  { %1428 = vmatprep.subr.mxu0 %v1574_v1 }
 0x35a   :  { %v375_v45 = vpop.f32.mrf.mxu0 }
 0x35b   :  { %v379_v46 = vmul.f32 2.0, %v375_v45 }
 0x35c   :  { %v1401_v47 = vpop.f32.mrf.mxu0 }
 0x35d   :  { %v1722_v49 = vsub.f32 %v1266_v44, %v379_v46  ;;  %v1274_v44 = vld [vmem:[%s2005_s3 + $0x160] ss:$0 sm:$0xff] }
 0x35f   :  { %v405_v51 = vsub.f32 %v304_v48, %v1722_v49  ;;  %v1272_v48 = vld [vmem:[%s2004_s2 + $0x10] sm:$0xff]  ;;  %v385_v60 = vsel %vm128_vm2, %v1722_v49, inf }
 0x361   :  { %v407_v52 = vmul.f32 %v1727_v50, %v405_v51 }
 0x363   :  { %v408_v53 = vsel %vm128_vm2, %v407_v52, -inf }
 0x364   :  { %409 = vmax.xlane.f32.xlu0 %v408_v53 }
 0x3ed   :  { %v410_v54 = vpop.xlane.xlu0 %409 }
 0x3ee   :  { %v411_v55 = vsub.f32 %v407_v52, %v410_v54 }
 0x3f0   :  { %v412_v56 = vmul.f32 1.442695, %v411_v55 }
 0x3f2   :  { %1518 = vpow2.f32 %v412_v56 }
 0x3ff   :  { %v1519_v57 = vpop.eup %1518 }
 0x400   :  { %v414_v58 = vsel %vm128_vm2, %v1519_v57, 0.0 }
 0x401   :  { %415 = vadd.xlane.f32.xlu0 %v414_v58 }
 0x48a   :  { %v416_v6 = vpop.xlane.xlu0 %415 }
 0x48b   :  { %1520 = vrcp.f32 %v416_v6  ;;  %v732_v6 = vld [vmem:[%s2005_s3 + $0x178] sm:$0xff] }
 0x498   :  { %v1521_v7 = vpop.eup %1520 }
 0x499   :  { %v418_v8 = vmul.f32 %v1521_v7, %v1519_v57  ;;  %v291_v7 = vlaneseq }
 0x49b   :  { %1419 = vmatmul.mubr.msk.f32.vlgmr.msra.gmra.mxu1 %vm128_vm2, %v418_v8  ;;  %v1894_v9 = vand.u32 127, %v291_v7 }
 0x49c   :  { %1451 = vmatprep.mubr.msk.f32.mxu1 %vm1575_vm0, %v1574_v1  ;;  %1448 = vmatpush3.msra.mxu1 %v731_v35 }
 0x49d   :  { %1449 = vmatprep.subr.mxu1 %v1574_v1 }
 0x49e   :  { %1450 = vmatpush3.msra.mxu1 %v730_v39 }
 0x49f   :  { %1454 = vmatprep.subr.mxu1 %v1574_v1 }
 0x55b   :  { %v1776_v10 = vpop.f32.mrf.mxu1 }
 0x55c   :  { %v1780_v11 = vsub.f32 %v1710_v42, %v1776_v10 }
 0x55d   :  { %v1420_v12 = vpop.f32.mrf.mxu1 }
 0x55e   :  { %1426 = vmatmul.mubr.msk.f32.vlgmr.msra.gmra.mxu0 %vm305_vm3, %v1780_v11 }
 0x55f   :  { %1444 = vmatprep.mubr.msk.f32.mxu0 %vm1575_vm0, %v1574_v1  ;;  %1429 = vmatpush3.msra.mxu0 %v521_v27  ;;  %v492_v27 = vsub.f32 %v1776_v10, %v1710_v42 }
 0x560   :  { %1430 = vmatprep.subr.mxu0 %v1574_v1 }
 0x561   :  { %1431 = vmatpush3.msra.mxu0 %v520_v28 }
 0x562   :  { %1432 = vmatprep.subr.mxu0 %v1574_v1 }
 0x563   :  { %1433 = vmatpush3.msra.mxu0 %v519_v29  ;;  %v493_v29 = vmul.f32 %v492_v27, %v492_v27 }
 0x564   :  { %1434 = vmatprep.subr.mxu0 %v1574_v1 }
 0x565   :  { %1435 = vmatpush3.msra.mxu0 %v518_v30 }
 0x566   :  { %1436 = vmatprep.subr.mxu0 %v1574_v1 }
 0x567   :  { %1437 = vmatpush3.msra.mxu0 %v517_v31  ;;  %v494_v31 = vsel %vm305_vm3, %v493_v29, 0.0 }
 0x568   :  { %1438 = vmatprep.subr.mxu0 %v1574_v1 }
 0x569   :  { %1439 = vmatpush3.msra.mxu0 %v516_v32 }
 0x56a   :  { %1440 = vmatprep.subr.mxu0 %v1574_v1 }
 0x56b   :  { %1441 = vmatpush3.msra.mxu0 %v515_v33 }
 0x56c   :  { %1442 = vmatprep.subr.mxu0 %v1574_v1 }
 0x56d   :  { %1443 = vmatpush3.msra.mxu0 %v514_v34  ;;  %v1503_v34 = vld [vmem:[%s2006_s4] sm:$0xff]  }
 0x56e   :  { %1473 = vmatprep.subr.bf16.mxu0 %v1574_v1 }
 0x61e   :  { %v594_v14 = vpop.f32.mrf.mxu0 }
 0x61f   :  { %v598_v15 = vmul.f32 2.0, %v594_v14 }
 0x620   :  { %v1427_v16 = vpop.f32.mrf.mxu0 }
 0x621   :  { %v1792_v18 = vsub.f32 %v1270_v13, %v598_v15 }
 0x623   :  { %v624_v19 = vsub.f32 %v1268_v17, %v1792_v18 }
 0x625   :  { %v625_v20 = vmul.f32 %v624_v19, %v1727_v50 }
 0x627   :  { %v626_v21 = vsel %vm128_vm2, %v625_v20, -inf }
 0x628   :  { %627 = vmax.xlane.f32.xlu1 %v626_v21 }
 0x6b1   :  { %v628_v22 = vpop.xlane.xlu1 %627 }
 0x6b2   :  { %v629_v23 = vsub.f32 %v625_v20, %v628_v22 }
 0x6b4   :  { %v630_v24 = vmul.f32 1.442695, %v629_v23 }
 0x6b6   :  { %1522 = vpow2.f32 %v630_v24  ;;  %v499_v24 = vmul.f32 %v1776_v10, %v1776_v10 }
 0x6c3   :  { %v1523_v25 = vpop.eup %1522 }
 0x6c4   :  { %v632_v26 = vsel %vm128_vm2, %v1523_v25, 0.0 }
 0x6c5   :  { %633 = vadd.xlane.f32.xlu1 %v632_v26 }
 0x74e   :  { %v634_v36 = vpop.xlane.xlu1 %633 }
 0x74f   :  { %1524 = vrcp.f32 %v634_v36 }
 0x75c   :  { %v1525_v37 = vpop.eup %1524 }
 0x75d   :  { %v636_v38 = vmul.f32 %v1525_v37, %v1523_v25  ;;  %v500_v25 = vsel %vm305_vm3, %v499_v24, 0.0 }
 0x75f   :  { %1445 = vmatmul.mubr.msk.f32.vlgmr.msra.gmra.mxu0 %vm128_vm2, %v636_v38 }
 0x760   :  { %1475 = vmatprep.mubr.msk.bf16.mxu0 %vm1575_vm0, %v1574_v1  ;;  %1474 = vmatpush3.bf16.msra.mxu0 %v1503_v34 }
 0x761   :  { %1479 = vmatprep.subr.bf16.mxu0 %v1574_v1 }
 0x81f   :  { %v1841_v40 = vpop.f32.mrf.mxu0 }
 0x820   :  { %v1845_v41 = vsub.f32 %v1780_v11, %v1841_v40  ;;  %v717_v26 = vmul.f32 %v1841_v40, %v1841_v40  ;;  %v710_v30 = vsub.f32 %v1841_v40, %v1780_v11  ;;  %v728_v42 = vadd.f32 %v1841_v40, %v1776_v10  ;;  %v1504_v10 = vld [vmem:[%s2006_s4 + $0x10] sm:$0xff]   ;;  %v1505_v40 = vld [vmem:[%s2006_s4 + $0x8] sm:$0xff]  }
 0x821   :  { %v1446_v43 = vpop.f32.mrf.mxu0 }
 0x822   :  { %1452 = vmatmul.mubr.msk.f32.vlgmr.msra.gmra.mxu1 %vm305_vm3, %v1845_v41  ;;  %v718_v28 = vsel %vm305_vm3, %v717_v26, 0.0  ;;  %v711_v32 = vmul.f32 %v710_v30, %v710_v30 }
 0x823   :  { %1470 = vmatprep.mubr.msk.f32.mxu1 %vm1575_vm0, %v1574_v1 }
 0x824   :  { %v712_v33 = vsel %vm305_vm3, %v711_v32, 0.0 }
 0x8e2   :  { %v812_v45 = vpop.f32.mrf.mxu1 }
 0x8e3   :  { %v816_v46 = vmul.f32 2.0, %v812_v45 }
 0x8e4   :  { %v1453_v47 = vpop.f32.mrf.mxu1 }
 0x8e5   :  { %v821_v51 = vsub.f32 %v1274_v44, %v816_v46 }
 0x8e7   :  { %v842_v52 = vsub.f32 %v1272_v48, %v821_v51  ;;  %v822_v61 = vsel %vm128_vm2, %v821_v51, inf }
 0x8e9   :  { %v843_v53 = vmul.f32 %v842_v52, %v1727_v50  ;;  %v739_v50 = vld [vmem:[%s2005_s3 + $0x1b0] sm:$0xff] }
 0x8ea   :  { %1455 = vmatpush3.msra.mxu1 %v739_v50  ;;  %v1508_v50 = vld [vmem:[%s2006_s4 + $0x20] sm:$0xff]  }
 0x8eb   :  { %v844_v54 = vsel %vm128_vm2, %v843_v53, -inf  ;;  %1456 = vmatprep.subr.mxu1 %v1574_v1 }
 0x8ec   :  { %845 = vmax.xlane.f32.xlu0 %v844_v54  ;;  %1457 = vmatpush3.msra.mxu1 %v738_v62  ;;  %v1509_v62 = vld [vmem:[%s2006_s4 + $0x18] sm:$0xff]  }
 0x8ed   :  { %1458 = vmatprep.subr.mxu1 %v1574_v1 }
 0x8ee   :  { %1459 = vmatpush3.msra.mxu1 %v737_v63  ;;  %v1279_v63 = vld [vmem:[%s2005_s3 + $0xa0] ss:$0 sm:$0xff] }
 0x8ef   :  { %1460 = vmatprep.subr.mxu1 %v1574_v1 }
 0x8f0   :  { %1461 = vmatpush3.msra.mxu1 %v736_v0 }
 0x8f1   :  { %1462 = vmatprep.subr.mxu1 %v1574_v1 }
 0x8f2   :  { %1463 = vmatpush3.msra.mxu1 %v735_v2 }
 0x8f3   :  { %1464 = vmatprep.subr.mxu1 %v1574_v1 }
 0x8f4   :  { %1465 = vmatpush3.msra.mxu1 %v734_v3 }
 0x8f5   :  { %1466 = vmatprep.subr.mxu1 %v1574_v1 }
 0x8f6   :  { %1467 = vmatpush3.msra.mxu1 %v733_v4 }
 0x8f7   :  { %1468 = vmatprep.subr.mxu1 %v1574_v1 }
 0x8f8   :  { %1469 = vmatpush3.msra.mxu1 %v732_v6 }
 0x975   :  { %v846_v55 = vpop.xlane.xlu0 %845 }
 0x976   :  { %v847_v56 = vsub.f32 %v843_v53, %v846_v55 }
 0x978   :  { %v848_v57 = vmul.f32 1.442695, %v847_v56 }
 0x97a   :  { %1526 = vpow2.f32 %v848_v57 }
 0x987   :  { %v1527_v58 = vpop.eup %1526 }
 0x988   :  { %v850_v59 = vsel %vm128_vm2, %v1527_v58, 0.0 }
 0x989   :  { %851 = vadd.xlane.f32.xlu1 %v850_v59 }
 0x98d   :  { %386 = vmin.xlane.f32.xlu1 %v385_v60  ;;  %v1506_v60 = vld [vmem:[%s2006_s4 + $0x30] sm:$0xff]  }
 0x991   :  { %823 = vmin.xlane.f32.xlu1 %v822_v61  ;;  %v1507_v61 = vld [vmem:[%s2006_s4 + $0x28] sm:$0xff]  }
 0xa12   :  { %v852_v8 = vpop.xlane.xlu1 %851 }
 0xa13   :  { %1528 = vrcp.f32 %v852_v8 }
 0xa16   :  { %v387_v12 = vpop.xlane.xlu1 %386 }
 0xa17   :  { %vm388_vm4 = vcmp.le.f32.partialorder %v1722_v49, %v387_v12 }
 0xa18   :  { %v389_v13 = vsel %vm388_vm4, %v1894_v9, 64  ;;  %vm1231_vm4 = vcmask 23552  }
 0xa19   :  { %v1899_v14 = vsel %vm128_vm2, %v389_v13, 2147483647 }
 0xa1a   :  { %v824_v15 = vpop.xlane.xlu1 %823  ;;  %v392_v16 = vshra.s32 %v1899_v14, 16 }
 0xa1b   :  { %vm825_vm5 = vcmp.le.f32.partialorder %v821_v51, %v824_v15 }
 0xa1c   :  { %v826_v17 = vsel %vm825_vm5, %v1894_v9, 64  ;;  %v1903_v19 = vcvt.s32.f32 %v392_v16  ;;  %vm1234_vm5 = vcmask 39936  }
 0xa1d   :  { %v1906_v20 = vsel %vm128_vm2, %v826_v17, 2147483647  ;;  %v1283_v17 = vld [vmem:[%s2005_s3 + $0xa8] ss:$0 sm:$0xff] }
 0xa1e   :  { %395 = vmin.xlane.f32.xlu1 %v1903_v19  ;;  %v829_v49 = vshra.s32 %v1906_v20, 16 }
 0xa20   :  { %v1529_v21 = vpop.eup %1528  ;;  %v1910_v22 = vcvt.s32.f32 %v829_v49 }
 0xa21   :  { %v854_v23 = vmul.f32 %v1529_v21, %v1527_v58 }
 0xa22   :  { %832 = vmin.xlane.f32.xlu1 %v1910_v22 }
 0xa23   :  { %1471 = vmatmul.mubr.msk.f32.vlgmr.msra.gmra.mxu1 %vm128_vm2, %v854_v23 }
 0xa26   :  { %501 = vadd.xlane.f32.xlu1 %v500_v25 }
 0xa2a   :  { %719 = vadd.xlane.f32.xlu1 %v718_v28  ;;  %v604_v28 = vsel %vm128_vm2, %v1792_v18, inf }
 0xa2e   :  { %495 = vadd.xlane.f32.xlu1 %v494_v31 }
 0xa32   :  { %713 = vadd.xlane.f32.xlu1 %v712_v33 }
 0xae3   :  { %v924_v35 = vpop.f32.mrf.mxu1 }
 0xae4   :  { %v946_v11 = vadd.f32 %v924_v35, %v728_v42  ;;  %v935_v36 = vmul.f32 %v924_v35, %v924_v35  ;;  %v928_v37 = vsub.f32 %v924_v35, %v1845_v41  ;;  %v1276_v41 = vld [vmem:[%s2005_s3 + $0x98] ss:$0 sm:$0xff]  ;;  %s1576_s3 = smov 100  }
 0xae5   :  { %v1472_v38 = vpop.f32.mrf.mxu1 }
 0xae6   :  { %v947_v39 = vpack.c.bf16 %v946_v11, %v946_v11  ;;  %v936_v43 = vsel %vm305_vm3, %v935_v36, 0.0  ;;  %v929_v44 = vmul.f32 %v928_v37, %v928_v37 }
 0xae7   :  { %937 = vadd.xlane.f32.xlu1 %v936_v43 }
 0xae8   :  { %1476 = vmatmul.mubr.msk.bf16.vlgmr.msra.gmra.mxu0 %vm305_vm3, %v947_v39  ;;  %v930_v45 = vsel %vm305_vm3, %v929_v44, 0.0  ;;  %vm1229_vm3 = vcmask 15360  }
 0xae9   :  { %1483 = vmatprep.mubr.msk.bf16.mxu0 %vm1575_vm0, %v1574_v1  ;;  %1480 = vmatpush3.bf16.msra.mxu0 %v1504_v10 }
 0xaea   :  { %1481 = vmatprep.subr.bf16.mxu0 %v1574_v1 }
 0xaeb   :  { %931 = vadd.xlane.f32.xlu1 %v930_v45 }
 0xaed   :  { %1482 = vmatpush3.bf16.msra.mxu0 %v1505_v40 }
 0xaee   :  { %1487 = vmatprep.subr.bf16.mxu0 %v1574_v1 }
 0xba8   :  { %v998_v46 = vpop.f32.mrf.mxu0 }
 0xba9   :  { %v999_v47 = vadd.f32 %v1276_v41, %v998_v46 }
 0xbaa   :  { %v1477_v48 = vpop.f32.mrf.mxu0 }
 0xbab   :  { %v1004_v51 = vsub.f32 0.0, %v999_v47 }
 0xbac   :  { %v1001_v52 = vpop.f32.mrf.mxu0 }
 0xbad   :  { %v1005_v53 = vmul.f32 1.442695, %v1004_v51  ;;  %v396_v52 = vpop.xlane.xlu1 %395 }
 0xbae   :  { %v1478_v54 = vpop.f32.mrf.mxu0  ;;  %vm397_vm9 = vcmp.eq.f32.partialorder %v1903_v19, %v396_v52 }
 0xbaf   :  { %1530 = vpow2.f32 %v1005_v53  ;;  %v391_v53 = vand.u32 65535, %v1899_v14 }
 0xbbc   :  { %v1531_v55 = vpop.eup %1530 }
 0xbbd   :  { %v1007_v56 = vadd.f32 1.0, %v1531_v55 }
 0xbbf   :  { %1532 = vrcp.f32 %v1007_v56 }
 0xbcc   :  { %v1533_v57 = vpop.eup %1532 }
 0xbcd   :  { %v1009_v58 = vmul.f32 %v1533_v57, %v999_v47  ;;  %v393_v57 = vcvt.s32.f32 %v391_v53 }
 0xbcf   :  { %v1010_v59 = vpack.c.bf16 %v1009_v58, %v1009_v58 }
 0xbd1   :  { %1484 = vmatmul.mubr.msk.bf16.vlgmr.msra.gmra.mxu0 %vm34_vm1, %v1010_v59 }
 0xbd2   :  { %1495 = vmatprep.mubr.msk.bf16.mxu0 %vm1575_vm0, %v1574_v1  ;;  %1488 = vmatpush3.bf16.msra.mxu0 %v1506_v60  ;;  %v398_v60 = vsel %vm397_vm9, %v393_v57, inf  ;;  %vm1240_vm9 = vcmask 64512  }
 0xbd3   :  { %1489 = vmatprep.subr.bf16.mxu0 %v1574_v1 }
 0xbd6   :  { %1490 = vmatpush3.bf16.msra.mxu0 %v1507_v61 }
 0xbd7   :  { %1491 = vmatprep.subr.bf16.mxu0 %v1574_v1 }
 0xbda   :  { %1492 = vmatpush3.bf16.msra.mxu0 %v1508_v50  ;;  %v1989_v50 = vpop.xlane.xlu1 %832 }
 0xbdb   :  { %1493 = vmatprep.subr.bf16.mxu0 %v1574_v1  ;;  %vm834_vm11 = vcmp.eq.f32.partialorder %v1910_v22, %v1989_v50 }
 0xbde   :  { %1494 = vmatpush3.bf16.msra.mxu0 %v1509_v62 }
 0xc91   :  { %v1069_v0 = vpop.f32.mrf.mxu0 }
 0xc92   :  { %v1070_v2 = vadd.f32 %v1279_v63, %v1069_v0  ;;  %v828_v63 = vand.u32 65535, %v1906_v20 }
 0xc93   :  { %v1485_v3 = vpop.f32.mrf.mxu0 }
 0xc94   :  { %v1075_v4 = vsub.f32 0.0, %v1070_v2  ;;  %v830_v19 = vcvt.s32.f32 %v828_v63 }
 0xc95   :  { %v1072_v6 = vpop.f32.mrf.mxu0 }
 0xc96   :  { %v1076_v7 = vmul.f32 1.442695, %v1075_v4  ;;  %v835_v3 = vsel %vm834_vm11, %v830_v19, inf }
 0xc97   :  { %v1486_v8 = vpop.f32.mrf.mxu0 }
 0xc98   :  { %1534 = vpow2.f32 %v1076_v7 }
 0xca5   :  { %v1535_v12 = vpop.eup %1534 }
 0xca6   :  { %v1078_v13 = vadd.f32 1.0, %v1535_v12 }
 0xca8   :  { %1536 = vrcp.f32 %v1078_v13 }
 0xcb5   :  { %v1537_v1 = vpop.eup %1536 }
 0xcb6   :  { %v1080_v15 = vmul.f32 %v1537_v1, %v1070_v2 }
 0xcb8   :  { %v1081_v16 = vpack.c.bf16 %v1080_v15, %v1080_v15 }
 0xcba   :  { %1496 = vmatmul.mubr.msk.bf16.vlgmr.msra.gmra.mxu0 %vm128_vm2, %v1081_v16 }
 0xd7a   :  { %v1156_v49 = vpop.f32.mrf.mxu0 }
 0xd7b   :  { %v1157_v21 = vadd.f32 %v1283_v17, %v1156_v49 }
 0xd7c   :  { %v1497_v23 = vpop.f32.mrf.mxu0 }
 0xd7d   :  { %v1162_v24 = vmul.f32 %v1157_v21, %v1157_v21 }
 0xd7e   :  { %v1159_v25 = vpop.f32.mrf.mxu0 }
 0xd7f   :  { %v1163_v26 = vsel %vm34_vm1, %v1162_v24, 0.0 }
 0xd80   :  { %1164 = vadd.xlane.f32.xlu0 %v1163_v26  ;;  %v1498_v27 = vpop.f32.mrf.mxu0 }
 0xd84   :  { %605 = vmin.xlane.f32.xlu0 %v604_v28 }
 0xe09   :  { %v1165_v29 = vpop.xlane.xlu0 %1164 }
 0xe0a   :  { %v1166_v30 = vmax.f32 %v1165_v29, 1e-24 }
 0xe0c   :  { %1538 = vrsqrt.f32 %v1166_v30 }
 0xe0d   :  { %v606_v31 = vpop.xlane.xlu0 %605 }
 0xe0e   :  { %vm607_vm6 = vcmp.le.f32.partialorder %v1792_v18, %v606_v31 }
 0xe0f   :  { %v608_v32 = vsel %vm607_vm6, %v1894_v9, 64  ;;  %vm1236_vm6 = vcmask 48128  }
 0xe10   :  { %v609_v34 = vsel %vm128_vm2, %v608_v32, 2147483647 }
 0xe11   :  { %v611_v36 = vshra.s32 %v609_v34, 16  ;;  %v610_v59 = vand.u32 65535, %v609_v34 }
 0xe13   :  { %v613_v43 = vcvt.s32.f32 %v611_v36  ;;  %v612_v14 = vcvt.s32.f32 %v610_v59 }
 0xe19   :  { %v1539_v33 = vpop.eup %1538 }
 0xe1a   :  { %v1168_v42 = vmul.f32 %v1539_v33, %v1157_v21  ;;  %v402_v21 = vcvt.f32.s32 %v396_v52 }
 0xe1c   :  { %v1169_v35 = vmul.f32 %v1168_v42, %v1168_v42  ;;  %v1185_v11 = vand.u32 2147483647, %v1168_v42  ;;  %v1182_v9 = vmax.f32 %v1168_v42, 0.0  ;;  %v1183_v45 = vmul.f32 %v1168_v42, %v1630_v5 }
 0xe1d   :  { %v403_v28 = vshll.u32 %v402_v21, 16 }
 0xe1e   :  { %v1171_v37 = vsel %vm1170_vm7, %v1169_v35, 0.0  ;;  %v1186_v38 = vsub.f32 0.0, %v1185_v11  ;;  %v1184_v40 = vsub.f32 %v1182_v9, %v1183_v45 }
 0xe1f   :  { %1172 = vadd.xlane.f32.xlu0 %v1171_v37 }
 0xe20   :  { %v1187_v39 = vmul.f32 1.442695, %v1186_v38 }
 0xe22   :  { %1540 = vpow2.f32 %v1187_v39  ;;  %v839_v39 = vcvt.f32.s32 %v1989_v50 }
 0xe23   :  { %614 = vmin.xlane.f32.xlu0 %v613_v43 }
 0xe24   :  { %v840_v53 = vshll.u32 %v839_v39, 16 }
 0xe2f   :  { %v1541_v44 = vpop.eup %1540 }
 0xe30   :  { %v1189_v18 = vadd.f32 1.0, %v1541_v44 }
 0xe32   :  { %1542 = vlog2.f32 %v1189_v18 }
 0xe3f   :  { %v1543_v10 = vpop.eup %1542 }
 0xe40   :  { %v1191_v41 = vmul.f32 0.6931472, %v1543_v10 }
 0xe42   :  { %v1192_v46 = vadd.f32 %v1191_v41, %v1184_v40 }
 0xe44   :  { %1194 = vrot.lane.b32.xlu0 %v1192_v46, %s1576_s3 }
 0xea8   :  { %v1173_v47 = vpop.xlane.xlu0 %1172 }
 0xea9   :  { %v1174_v48 = vmax.f32 %v1173_v47, 1e-24 }
 0xeab   :  { %1544 = vrsqrt.f32 %v1174_v48 }
 0xeac   :  { %v1982_v51 = vpop.xlane.xlu0 %614 }
 0xead   :  { %vm616_vm10 = vcmp.eq.f32.partialorder %v613_v43, %v1982_v51  ;;  %v621_v33 = vcvt.f32.s32 %v1982_v51 }
 0xeae   :  { %v617_v2 = vsel %vm616_vm10, %v612_v14, inf }
 0xeaf   :  { %v622_v9 = vshll.u32 %v621_v33, 16 }
 0xeb6   :  { %v1195_v54 = vpop.permute.xlu0 %1194 }
 0xeb7   :  { %v1198_v55 = vsel %vm1197_vm8, %v1195_v54, 0.0 }
 0xeb8   :  { %v1545_v56 = vpop.eup %1544  ;;  %1199 = vadd.xlane.f32.xlu1 %v1198_v55 }
 0xeb9   :  { %v1176_v58 = vmul.f32 %v1545_v56, %v1168_v42 }
 0xebb   :  { %v1177_v61 = vsub.f32 %v1176_v58, %v1630_v5  ;;  %v502_v5 = vpop.xlane.xlu1 %501 }
 0xebc   :  { %399 = vmin.xlane.f32.xlu1 %v398_v60  ;;  %vm505_vm14 = vcmp.eq.f32.partialorder %v502_v5, inf  ;;  %v508_v42 = vand.u32 2147483648, %v502_v5  ;;  %vm507_vm1 = vcmp.eq.f32.partialorder %v502_v5, 0.0 }
 0xebd   :  { %v1178_v62 = vmul.f32 %v1177_v61, %v1177_v61 }
 0xebf   :  { %v1179_v0 = vsel %vm1170_vm7, %v1178_v62, 0.0  ;;  %v720_v4 = vpop.xlane.xlu1 %719  ;;  %vm1238_vm7 = vcmask 56320  }
 0xec0   :  { %1180 = vadd.xlane.f32.xlu0 %v1179_v0  ;;  %618 = vmin.xlane.f32.xlu1 %v617_v2  ;;  %1546 = vrsqrt.f32 %v720_v4  ;;  %vm723_vm12 = vcmp.eq.f32.partialorder %v720_v4, inf  ;;  %v726_v30 = vand.u32 2147483648, %v720_v4  ;;  %vm725_vm0 = vcmp.eq.f32.partialorder %v720_v4, 0.0 }
 0xec1   :  { %1548 = vrsqrt.f32 %v502_v5 }
 0xec3   :  { %v496_v6 = vpop.xlane.xlu1 %495 }
 0xec4   :  { %836 = vmin.xlane.f32.xlu1 %v835_v3  ;;  %v497_v13 = vmul.f32 1.25, %v496_v6 }
 0xec7   :  { %v714_v7 = vpop.xlane.xlu1 %713 }
 0xec8   :  { %v715_v12 = vmul.f32 1.25, %v714_v7 }
 0xeca   :  { %v716_v15 = vadd.f32 %v715_v12, %v497_v13 }
 0xecb   :  { %v938_v8 = vpop.xlane.xlu1 %937 }
 0xecc   :  { %1550 = vrsqrt.f32 %v938_v8  ;;  %vm941_vm15 = vcmp.eq.f32.partialorder %v938_v8, inf  ;;  %v944_v37 = vand.u32 2147483648, %v938_v8  ;;  %vm943_vm2 = vcmp.eq.f32.partialorder %v938_v8, 0.0 }
 0xecd   :  { %v1547_v16 = vpop.eup %1546 }
 0xece   :  { %v1549_v17 = vpop.eup %1548  ;;  %v722_v23 = vmul.f32 %v1547_v16, %v720_v4 }
 0xecf   :  { %v932_v20 = vpop.xlane.xlu1 %931  ;;  %v504_v25 = vmul.f32 %v1549_v17, %v502_v5 }
 0xed0   :  { %v933_v1 = vmul.f32 1.25, %v932_v20  ;;  %v724_v29 = vsel %vm723_vm12, %v720_v4, %v722_v23 }
 0xed1   :  { %v506_v32 = vsel %vm505_vm14, %v502_v5, %v504_v25  ;;  %v727_v36 = vsel %vm725_vm0, %v726_v30, %v724_v29 }
 0xed2   :  { %v934_v49 = vadd.f32 %v933_v1, %v716_v15  ;;  %v509_v43 = vsel %vm507_vm1, %v508_v42, %v506_v32 }
 0xed3   :  { %v1228_v46 = vsel %vm1227_vm13, %v509_v43, %v727_v36 }
 0xed4   :  { %v1217_v27 = vrot.slane %v934_v49, 4 }
 0xed6   :  { %v1218_v11 = vadd.f32 %v1217_v27, %v934_v49 }
 0xed8   :  { %v1219_v41 = vrot.slane %v1218_v11, 2 }
 0xed9   :  { %v1551_v22 = vpop.eup %1550 }
 0xeda   :  { %v940_v26 = vmul.f32 %v1551_v22, %v938_v8  ;;  %v1220_v60 = vadd.f32 %v1219_v41, %v1218_v11 }
 0xedc   :  { %v942_v35 = vsel %vm941_vm15, %v938_v8, %v940_v26  ;;  %v1221_v6 = vrot.slane %v1220_v60, 1 }
 0xedd   :  { %v945_v45 = vsel %vm943_vm2, %v944_v37, %v942_v35 }
 0xede   :  { %v1230_v54 = vsel %vm1229_vm3, %v1228_v46, %v945_v45  ;;  %v1222_v12 = vadd.f32 %v1221_v6, %v1220_v60 }
 0xee0   :  { %v1223_v15 = vmul.f32 0.125, %v1222_v12 }
 0xf41   :  { %v1200_v24 = vpop.xlane.xlu1 %1199 }
 0xf45   :  { %v400_v31 = vpop.xlane.xlu1 %399 }
 0xf46   :  { %v401_v34 = vcvt.f32.s32 %v400_v31 }
 0xf48   :  { %v404_v38 = vadd.s32 %v403_v28, %v401_v34 }
 0xf49   :  { %v1181_v44 = vpop.xlane.xlu0 %1180  ;;  %v619_v18 = vpop.xlane.xlu1 %618 }
 0xf4a   :  { %v1201_v10 = vadd.f32 %v1200_v24, %v1181_v44  ;;  %v620_v40 = vcvt.f32.s32 %v619_v18  ;;  %v1224_v47 = vcvt.s32.f32 %v404_v38 }
 0xf4c   :  { %v1202_v48 = vadd.f32 %v1201_v10, %v934_v49  ;;  %v1210_v51 = vrot.slane %v1201_v10, 4  ;;  %v623_v52 = vadd.s32 %v622_v9, %v620_v40  ;;  %v1232_v61 = vsel %vm1231_vm4, %v1230_v54, %v1224_v47 }
 0xf4d   :  { %v837_v55 = vpop.xlane.xlu1 %836 }
 0xf4e   :  { %v1203_v56 = vrot.slane %v1202_v48, 4  ;;  %v1211_v57 = vadd.f32 %v1210_v51, %v1201_v10  ;;  %v1225_v58 = vcvt.s32.f32 %v623_v52  ;;  %v838_v59 = vcvt.f32.s32 %v837_v55 }
 0xf50   :  { %v1204_v50 = vadd.f32 %v1203_v56, %v1202_v48  ;;  %v1212_v62 = vrot.slane %v1211_v57, 2  ;;  %v1233_v14 = vsel %vm1197_vm8, %v1232_v61, %v1225_v58  ;;  %v841_v63 = vadd.s32 %v840_v53, %v838_v59 }
 0xf51   :  { %vm1242_vm8 = vcmask 72704  }
 0xf52   :  { %v1205_v0 = vrot.slane %v1204_v50, 2  ;;  %v1213_v2 = vadd.f32 %v1212_v62, %v1211_v57  ;;  %v1226_v19 = vcvt.s32.f32 %v841_v63 }
 0xf54   :  { %v1206_v3 = vadd.f32 %v1205_v0, %v1204_v50  ;;  %v1214_v5 = vrot.slane %v1213_v2, 1  ;;  %v1235_v4 = vsel %vm1234_vm5, %v1233_v14, %v1226_v19 }
 0xf56   :  { %v1207_v7 = vrot.slane %v1206_v3, 1  ;;  %v1215_v8 = vadd.f32 %v1214_v5, %v1213_v2 }
 0xf58   :  { %v1208_v20 = vadd.f32 %v1207_v7, %v1206_v3  ;;  %v1216_v1 = vmul.f32 0.125, %v1215_v8 }
 0xf5a   :  { %v1209_v13 = vmul.f32 0.125, %v1208_v20 }
 0xf5c   :  { %v1237_v16 = vsel %vm1236_vm6, %v1235_v4, %v1209_v13 }
 0xf5d   :  { %v1239_v17 = vsel %vm1238_vm7, %v1237_v16, %v1216_v1 }
 0xf5e   :  { %v1241_v49 = vsel %vm1240_vm9, %v1239_v17, %v1223_v15 }
 0xf5f   :  { %v1243_v22 = vsel %vm1242_vm8, %v1241_v49, 0.0 }
 0xf60   :  { %1244 = vst [vmem:[#allocation3] sm:$0xff] %v1243_v22 }
 0xf61   :  { %1563 = shalt.err (!%p1560_p4)
}
 0xf62   :  { %1254 = dma.vmem_to_hbm [thread:$0]  %s1252_s17, 128, %s2007_s5, [#allocation4]  }
 0xf63   :  { %1572 = dma.done.wait [#allocation4], 128  }
 0xf64   :  { %1573 = vsyncadd [#allocation4], 4294967168 }
 0xf65   :  { %1258 = vsyncpa [#allocation4], 1 }

</bundles_post_ra>
